<compile_context>
chip_gen: v5e
topology: v5e:2x2
jax: 0.10.0
libtpu: 0.0.40
codegen_flags: <defaults>
</compile_context>

<pallas_src>
import math

import jax
import jax.numpy as jnp
from jax.experimental import pallas as pl
from jax.experimental.pallas import tpu as pltpu

# ----------------------------- model config (small) -------------------------
VOCAB = 120
MAX_POS = 66
HIDDEN = 32
NUM_HEADS = 2
HEAD_DIM = HIDDEN // NUM_HEADS
INTERMEDIATE = 64
NUM_LAYERS = 2          # stands in for PhoBERT's 12 layers
LORA_LAYER = NUM_LAYERS - 1
LORA_R = 8
LORA_ALPHA = 16
LORA_SCALE = LORA_ALPHA / LORA_R   # peft scaling = alpha / r (dropout inactive in eval)
LN_EPS = 1e-5
PAD_IDX = 1             # RoBERTa padding idx (used for position-id offset)

VEC_LANES = 128         # packed per-layer vector slab width (one VMEM lane tile)
VEC_ROWS_PER_LAYER = 8  # bqkv, bo, b1, b2, ln1_g, ln1_b, ln2_g, ln2_b


# ------------------------------ in-kernel helpers ---------------------------
def _layer_norm(x, g, b):
    mu = jnp.mean(x, axis=-1, keepdims=True)
    var = jnp.mean((x - mu) ** 2, axis=-1, keepdims=True)
    return (x - mu) * jax.lax.rsqrt(var + LN_EPS) * g + b


def _gelu_tanh(x):
    # TODO(synk): PhoBERT uses exact erf-GELU; tanh approximation kept for robust Mosaic lowering.
    c = math.sqrt(2.0 / math.pi)
    return 0.5 * x * (1.0 + jnp.tanh(c * (x + 0.044715 * x * x * x)))


# ------------------------------ fused Pallas kernel -------------------------
def _fused_encoder_kernel(emb_ref, mask_ref, vecs_ref,
                          wqkv_ref, wo_ref, w1_ref, w2_ref,
                          la_ref, lb_ref,
                          o_ref):
    BS, H = emb_ref.shape
    H3 = 3 * H

    def vec(row, width):
        # (1, width) f32 slice of the packed bias/LN slab (static row, lane offset 0)
        return vecs_ref[row:row + 1, :width]

    # Embedding LayerNorm; hidden state stays resident in vregs for all layers.
    x = emb_ref[...]                              # (BS, H) f32
    x = _layer_norm(x, vec(0, H), vec(1, H))

    # Full additive mask (block-diagonal across batches + key padding), loaded once.
    mask2d = mask_ref[...]                        # (BS, BS) f32

    inv_sqrt_hd = 1.0 / math.sqrt(HEAD_DIM)

    for l in range(NUM_LAYERS):                   # static unroll (2 layers; use fori/grid at 12)
        base = 2 + l * VEC_ROWS_PER_LAYER
        bqkv = vec(base + 0, H3)
        bo = vec(base + 1, H)
        b1 = vec(base + 2, INTERMEDIATE)
        b2 = vec(base + 3, H)
        ln1_g = vec(base + 4, H)
        ln1_b = vec(base + 5, H)
        ln2_g = vec(base + 6, H)
        ln2_b = vec(base + 7, H)

        # --- attention: fused QKV, one lane-dense matmul -------------------
        qkv = jnp.dot(x.astype(jnp.bfloat16), wqkv_ref[l],
                      preferred_element_type=jnp.float32) + bqkv   # (BS, 3H) f32
        q = qkv[:, 0:H] * inv_sqrt_hd             # scale folded into q once per layer
        k = qkv[:, H:2 * H]
        v = qkv[:, 2 * H:H3]

        ctx_heads = []
        for h in range(NUM_HEADS):                # static; 2-D (BS,BS) score matmuls
            c0 = h * HEAD_DIM
            q_h = q[:, c0:c0 + HEAD_DIM]
            k_h = k[:, c0:c0 + HEAD_DIM]
            v_h = v[:, c0:c0 + HEAD_DIM]

            s = jnp.dot(q_h, k_h.T, preferred_element_type=jnp.float32) + mask2d
            s = s - jnp.max(s, axis=-1, keepdims=True)
            p = jnp.exp(s)
            p = p * pl.reciprocal(jnp.sum(p, axis=-1, keepdims=True), approx=True)
            ctx_heads.append(jnp.dot(p, v_h, preferred_element_type=jnp.float32))
        ctx = jnp.concatenate(ctx_heads, axis=-1)  # (BS, H) f32 — head-major columns

        # --- output projection fused over heads + LoRA on target layer -----
        ctx_b = ctx.astype(jnp.bfloat16)
        attn = jnp.dot(ctx_b, wo_ref[l], preferred_element_type=jnp.float32) + bo
        if l == LORA_LAYER:                        # statically gated: no dead matmuls elsewhere
            lora_mid = jnp.dot(ctx_b, la_ref[...],
                               preferred_element_type=jnp.float32)          # (BS, R)
            attn = attn + LORA_SCALE * jnp.dot(lora_mid.astype(jnp.bfloat16), lb_ref[...],
                                               preferred_element_type=jnp.float32)

        x1 = _layer_norm(attn + x, ln1_g, ln1_b)

        # --- feed-forward ---------------------------------------------------
        hmid = _gelu_tanh(jnp.dot(x1.astype(jnp.bfloat16), w1_ref[l],
                                  preferred_element_type=jnp.float32) + b1)
        ff = jnp.dot(hmid.astype(jnp.bfloat16), w2_ref[l],
                     preferred_element_type=jnp.float32) + b2
        x = _layer_norm(ff + x1, ln2_g, ln2_b)

    # Single lane-dense store; CLS rows are sliced out in the wrapper (free in XLA).
    o_ref[...] = x.astype(o_ref.dtype)


def fused_encoder(emb2d, mask2d, p):
    BS, H = emb2d.shape
    vmem = pl.BlockSpec(memory_space=pltpu.MemorySpace.VMEM)
    inputs = (emb2d, mask2d, p['vecs'],
              p['wqkv'], p['wo'], p['w1'], p['w2'],
              p['lora_a'], p['lora_b'])
    return pl.pallas_call(
        _fused_encoder_kernel,
        out_shape=jax.ShapeDtypeStruct((BS, H), jnp.float32),
        in_specs=[vmem] * len(inputs),
        out_specs=vmem,
    )(*inputs)


# ------------------------------ parameter init ------------------------------
def init_params(key):
    keys = jax.random.split(key, 3 + NUM_LAYERS)

    def nrm(k, shape, s=0.02):
        return (s * jax.random.normal(k, shape)).astype(jnp.float32)

    params = {
        'word_emb': nrm(keys[0], (VOCAB, HIDDEN)),
        'pos_emb': nrm(keys[1], (MAX_POS, HIDDEN)),
        'type_emb': nrm(keys[2], (1, HIDDEN)),
        'emb_ln_g': jnp.ones((1, HIDDEN), jnp.float32),
        'emb_ln_b': jnp.zeros((1, HIDDEN), jnp.float32),
        'layers': [],
    }
    for l in range(NUM_LAYERS):
        lk = jax.random.split(keys[3 + l], 8)
        # Only the last layer gets LoRA (stand-in for 'encoder.layer.11.attention.output.dense').
        # NOTE: PEFT initializes lora_B to zero; random here to exercise the LoRA path.
        is_target = (l == LORA_LAYER)
        layer = {
            'wq': nrm(lk[0], (HIDDEN, HIDDEN)), 'bq': jnp.zeros((1, HIDDEN), jnp.float32),
            'wk': nrm(lk[1], (HIDDEN, HIDDEN)), 'bk': jnp.zeros((1, HIDDEN), jnp.float32),
            'wv': nrm(lk[2], (HIDDEN, HIDDEN)), 'bv': jnp.zeros((1, HIDDEN), jnp.float32),
            'wo': nrm(lk[3], (HIDDEN, HIDDEN)), 'bo': jnp.zeros((1, HIDDEN), jnp.float32),
            'lora_a': nrm(lk[4], (HIDDEN, LORA_R), 0.1) if is_target else None,
            'lora_b': nrm(lk[5], (LORA_R, HIDDEN), 0.1) if is_target else None,
            'ln1_g': jnp.ones((1, HIDDEN), jnp.float32), 'ln1_b': jnp.zeros((1, HIDDEN), jnp.float32),
            'w1': nrm(lk[6], (HIDDEN, INTERMEDIATE)), 'b1': jnp.zeros((1, INTERMEDIATE), jnp.float32),
            'w2': nrm(lk[7], (INTERMEDIATE, HIDDEN)), 'b2': jnp.zeros((1, HIDDEN), jnp.float32),
            'ln2_g': jnp.ones((1, HIDDEN), jnp.float32), 'ln2_b': jnp.zeros((1, HIDDEN), jnp.float32),
        }
        params['layers'].append(layer)
    return params


def pack_params(params):
    """Pack weights into fused bf16 slabs and all small vectors into one f32 slab."""
    layers = params['layers']

    def padlane(v):
        v = jnp.asarray(v, jnp.float32).reshape(1, -1)
        return jnp.pad(v, ((0, 0), (0, VEC_LANES - v.shape[1])))

    # --- packed bias / LayerNorm vector slab: (2 + 8*L, 128) f32 -----------
    vec_rows = [padlane(params['emb_ln_g']), padlane(params['emb_ln_b'])]
    for l in layers:
        bqkv = jnp.concatenate([l['bq'], l['bk'], l['bv']], axis=-1)   # (1, 3H)
        vec_rows += [padlane(bqkv), padlane(l['bo']), padlane(l['b1']), padlane(l['b2']),
                     padlane(l['ln1_g']), padlane(l['ln1_b']),
                     padlane(l['ln2_g']), padlane(l['ln2_b'])]
    vecs = jnp.concatenate(vec_rows, axis=0)

    # --- fused weight slabs (bf16 matmul operands, f32 accumulation) -------
    wqkv = jnp.stack(
        [jnp.concatenate([l['wq'], l['wk'], l['wv']], axis=-1) for l in layers],
        axis=0).astype(jnp.bfloat16)                                   # (L, H, 3H)
    wo = jnp.stack([l['wo'] for l in layers], axis=0).astype(jnp.bfloat16)   # (L, H, H)
    w1 = jnp.stack([l['w1'] for l in layers], axis=0).astype(jnp.bfloat16)   # (L, H, I)
    w2 = jnp.stack([l['w2'] for l in layers], axis=0).astype(jnp.bfloat16)   # (L, I, H)

    target = layers[LORA_LAYER]
    return {
        'word_emb': params['word_emb'],
        'pos_emb': params['pos_emb'],
        'type_emb': params['type_emb'],
        'vecs': vecs,
        'wqkv': wqkv, 'wo': wo, 'w1': w1, 'w2': w2,
        'lora_a': target['lora_a'].astype(jnp.bfloat16),   # (H, R)
        'lora_b': target['lora_b'].astype(jnp.bfloat16),   # (R, H)
    }


# ------------------------------ forward (glue) -------------------------------
def bi_encoder_forward(packed, input_ids, attention_mask):
    B, S = input_ids.shape
    BS = B * S
    H = HIDDEN
    mask = attention_mask.astype(jnp.float32)

    # RoBERTa-style position ids (pad tokens -> padding_idx)
    position_ids = (jnp.cumsum(mask, axis=1) * mask).astype(jnp.int32) + PAD_IDX

    # TODO(synk): embedding gathers (data-dependent) stay in XLA; not worth a manual DMA gather here.
    emb = (jnp.take(packed['word_emb'], input_ids, axis=0)
           + jnp.take(packed['pos_emb'], position_ids, axis=0)
           + packed['type_emb'][0][None, None, :])
    emb2d = emb.reshape(BS, H).astype(jnp.float32)          # flatten in XLA (free)

    # Full additive mask built ONCE: block-diagonal across batches + key-padding bias.
    batch_idx = jnp.arange(BS) // S
    same_batch = batch_idx[:, None] == batch_idx[None, :]
    key_visible = (mask.reshape(BS) > 0.0)[None, :]
    mask2d = jnp.where(same_batch & key_visible, 0.0, -1e9).astype(jnp.float32)

    last_hidden = fused_encoder(emb2d, mask2d, packed)      # (BS, H)

    # CLS pooling: last_hidden_state[:, 0]  (padded query rows never pooled).
    return last_hidden.reshape(B, S, H)[:, 0, :]


# ----------------------------------- main ------------------------------------
if __name__ == "__main__":
    key = jax.random.PRNGKey(0)
    pkey, dkey = jax.random.split(key)
    params = init_params(pkey)
    packed = pack_params(params)

    B, S = 2, 8
    input_ids = jax.random.randint(dkey, (B, S), 2, VOCAB, dtype=jnp.int32)
    input_ids = input_ids.at[:, 0].set(0)                   # <s> / CLS token
    attention_mask = jnp.ones((B, S), dtype=jnp.int32).at[1, 6:].set(0)

    fwd = jax.jit(bi_encoder_forward)
    cls = fwd(packed, input_ids, attention_mask)
    cls = jax.block_until_ready(cls)
    assert cls.shape == (B, HIDDEN) and cls.dtype == jnp.float32
    assert bool(jnp.all(jnp.isfinite(cls)))
    print("KERNEL_OK")
</pallas_src>

<mosaic_0001>
module attributes {stable_mosaic.version = 11 : i64} {
  func.func @_fused_encoder_kernel(%arg0: memref<16x32xf32, #tpu.memory_space<vmem>>, %arg1: memref<16x16xf32, #tpu.memory_space<vmem>>, %arg2: memref<18x128xf32, #tpu.memory_space<vmem>>, %arg3: memref<2x32x96xbf16, #tpu.memory_space<vmem>>, %arg4: memref<2x32x32xbf16, #tpu.memory_space<vmem>>, %arg5: memref<2x32x64xbf16, #tpu.memory_space<vmem>>, %arg6: memref<2x64x32xbf16, #tpu.memory_space<vmem>>, %arg7: memref<32x8xbf16, #tpu.memory_space<vmem>>, %arg8: memref<8x32xbf16, #tpu.memory_space<vmem>>, %arg9: memref<16x32xf32, #tpu.memory_space<vmem>>) attributes {dimension_semantics = [], scalar_prefetch = 0 : i64, scratch_operands = 0 : i64, tpu.core_type = #tpu.core_type<tc>} {
    %c0 = arith.constant 0 : index
    %c0_0 = arith.constant 0 : index
    %0 = vector.load %arg0[%c0, %c0_0] : memref<16x32xf32, #tpu.memory_space<vmem>>, vector<16x32xf32>
    %c0_1 = arith.constant 0 : index
    %c0_2 = arith.constant 0 : index
    %1 = vector.load %arg2[%c0_1, %c0_2] : memref<18x128xf32, #tpu.memory_space<vmem>>, vector<1x32xf32>
    %c1 = arith.constant 1 : index
    %c0_3 = arith.constant 0 : index
    %2 = vector.load %arg2[%c1, %c0_3] : memref<18x128xf32, #tpu.memory_space<vmem>>, vector<1x32xf32>
    %cst = arith.constant dense<0.000000e+00> : vector<16xf32>
    %3 = vector.multi_reduction <add>, %0, %cst [1] : vector<16x32xf32> to vector<16xf32>
    %4 = vector.shape_cast %3 : vector<16xf32> to vector<16x1xf32>
    %cst_4 = arith.constant 3.200000e+01 : f32
    %5 = vector.broadcast %cst_4 : f32 to vector<16x1xf32>
    %6 = arith.divf %4, %5 : vector<16x1xf32>
    %7 = vector.broadcast %6 : vector<16x1xf32> to vector<16x32xf32>
    %8 = arith.subf %0, %7 : vector<16x32xf32>
    %9 = arith.mulf %8, %8 : vector<16x32xf32>
    %cst_5 = arith.constant dense<0.000000e+00> : vector<16xf32>
    %10 = vector.multi_reduction <add>, %9, %cst_5 [1] : vector<16x32xf32> to vector<16xf32>
    %11 = vector.shape_cast %10 : vector<16xf32> to vector<16x1xf32>
    %cst_6 = arith.constant 3.200000e+01 : f32
    %12 = vector.broadcast %cst_6 : f32 to vector<16x1xf32>
    %13 = arith.divf %11, %12 : vector<16x1xf32>
    %14 = vector.broadcast %6 : vector<16x1xf32> to vector<16x32xf32>
    %15 = arith.subf %0, %14 : vector<16x32xf32>
    %cst_7 = arith.constant 9.99999974E-6 : f32
    %16 = vector.broadcast %cst_7 : f32 to vector<16x1xf32>
    %17 = arith.addf %13, %16 : vector<16x1xf32>
    %18 = math.rsqrt %17 : vector<16x1xf32>
    %19 = vector.broadcast %18 : vector<16x1xf32> to vector<16x32xf32>
    %20 = arith.mulf %15, %19 : vector<16x32xf32>
    %21 = vector.broadcast %1 : vector<1x32xf32> to vector<16x32xf32>
    %22 = arith.mulf %20, %21 : vector<16x32xf32>
    %23 = vector.broadcast %2 : vector<1x32xf32> to vector<16x32xf32>
    %24 = arith.addf %22, %23 : vector<16x32xf32>
    %c0_8 = arith.constant 0 : index
    %c0_9 = arith.constant 0 : index
    %25 = vector.load %arg1[%c0_8, %c0_9] : memref<16x16xf32, #tpu.memory_space<vmem>>, vector<16x16xf32>
    %c2 = arith.constant 2 : index
    %c0_10 = arith.constant 0 : index
    %26 = vector.load %arg2[%c2, %c0_10] : memref<18x128xf32, #tpu.memory_space<vmem>>, vector<1x96xf32>
    %c3 = arith.constant 3 : index
    %c0_11 = arith.constant 0 : index
    %27 = vector.load %arg2[%c3, %c0_11] : memref<18x128xf32, #tpu.memory_space<vmem>>, vector<1x32xf32>
    %c4 = arith.constant 4 : index
    %c0_12 = arith.constant 0 : index
    %28 = vector.load %arg2[%c4, %c0_12] : memref<18x128xf32, #tpu.memory_space<vmem>>, vector<1x64xf32>
    %c5 = arith.constant 5 : index
    %c0_13 = arith.constant 0 : index
    %29 = vector.load %arg2[%c5, %c0_13] : memref<18x128xf32, #tpu.memory_space<vmem>>, vector<1x32xf32>
    %c6 = arith.constant 6 : index
    %c0_14 = arith.constant 0 : index
    %30 = vector.load %arg2[%c6, %c0_14] : memref<18x128xf32, #tpu.memory_space<vmem>>, vector<1x32xf32>
    %c7 = arith.constant 7 : index
    %c0_15 = arith.constant 0 : index
    %31 = vector.load %arg2[%c7, %c0_15] : memref<18x128xf32, #tpu.memory_space<vmem>>, vector<1x32xf32>
    %c8 = arith.constant 8 : index
    %c0_16 = arith.constant 0 : index
    %32 = vector.load %arg2[%c8, %c0_16] : memref<18x128xf32, #tpu.memory_space<vmem>>, vector<1x32xf32>
    %c9 = arith.constant 9 : index
    %c0_17 = arith.constant 0 : index
    %33 = vector.load %arg2[%c9, %c0_17] : memref<18x128xf32, #tpu.memory_space<vmem>>, vector<1x32xf32>
    %34 = arith.truncf %24 : vector<16x32xf32> to vector<16x32xbf16>
    %c0_18 = arith.constant 0 : index
    %c0_19 = arith.constant 0 : index
    %c0_20 = arith.constant 0 : index
    %35 = vector.load %arg3[%c0_18, %c0_19, %c0_20] : memref<2x32x96xbf16, #tpu.memory_space<vmem>>, vector<1x32x96xbf16>
    %36 = vector.shape_cast %35 : vector<1x32x96xbf16> to vector<32x96xbf16>
    %cst_21 = arith.constant dense<0.000000e+00> : vector<16x96xf32>
    %37 = tpu.matmul %34, %36, %cst_21 {dimension_numbers = #tpu.dot_dimension_numbers<[1], [0], [0], [1], [0, 0, 1, 1], [], []>} : vector<16x32xbf16>, vector<32x96xbf16>, vector<16x96xf32> -> vector<16x96xf32>
    %38 = vector.broadcast %26 : vector<1x96xf32> to vector<16x96xf32>
    %39 = arith.addf %37, %38 : vector<16x96xf32>
    %40 = vector.extract_strided_slice %39 {offsets = [0, 0], sizes = [16, 32], strides = [1, 1]} : vector<16x96xf32> to vector<16x32xf32>
    %cst_22 = arith.constant 2.500000e-01 : f32
    %41 = vector.broadcast %cst_22 : f32 to vector<16x32xf32>
    %42 = arith.mulf %40, %41 : vector<16x32xf32>
    %43 = vector.extract_strided_slice %39 {offsets = [0, 32], sizes = [16, 32], strides = [1, 1]} : vector<16x96xf32> to vector<16x32xf32>
    %44 = vector.extract_strided_slice %39 {offsets = [0, 64], sizes = [16, 32], strides = [1, 1]} : vector<16x96xf32> to vector<16x32xf32>
    %45 = vector.extract_strided_slice %42 {offsets = [0, 0], sizes = [16, 16], strides = [1, 1]} : vector<16x32xf32> to vector<16x16xf32>
    %46 = vector.extract_strided_slice %43 {offsets = [0, 0], sizes = [16, 16], strides = [1, 1]} : vector<16x32xf32> to vector<16x16xf32>
    %47 = vector.extract_strided_slice %44 {offsets = [0, 0], sizes = [16, 16], strides = [1, 1]} : vector<16x32xf32> to vector<16x16xf32>
    %48 = tpu.transpose %46, [1, 0] : vector<16x16xf32> -> vector<16x16xf32>
    %cst_23 = arith.constant dense<0.000000e+00> : vector<16x16xf32>
    %49 = tpu.matmul %45, %48, %cst_23 {dimension_numbers = #tpu.dot_dimension_numbers<[1], [0], [0], [1], [0, 0, 1, 1], [], []>} : vector<16x16xf32>, vector<16x16xf32>, vector<16x16xf32> -> vector<16x16xf32>
    %50 = arith.addf %49, %25 : vector<16x16xf32>
    %cst_24 = arith.constant dense<0xFF800000> : vector<16xf32>
    %51 = vector.multi_reduction <maximumf>, %50, %cst_24 [1] : vector<16x16xf32> to vector<16xf32>
    %52 = vector.shape_cast %51 : vector<16xf32> to vector<16x1xf32>
    %53 = vector.broadcast %52 : vector<16x1xf32> to vector<16x16xf32>
    %54 = arith.subf %50, %53 : vector<16x16xf32>
    %55 = math.exp %54 : vector<16x16xf32>
    %cst_25 = arith.constant dense<0.000000e+00> : vector<16xf32>
    %56 = vector.multi_reduction <add>, %55, %cst_25 [1] : vector<16x16xf32> to vector<16xf32>
    %57 = vector.shape_cast %56 : vector<16xf32> to vector<16x1xf32>
    %58 = tpu.reciprocal %57 {approx = true} : vector<16x1xf32> -> vector<16x1xf32>
    %59 = vector.broadcast %58 : vector<16x1xf32> to vector<16x16xf32>
    %60 = arith.mulf %55, %59 : vector<16x16xf32>
    %cst_26 = arith.constant dense<0.000000e+00> : vector<16x16xf32>
    %61 = tpu.matmul %60, %47, %cst_26 {dimension_numbers = #tpu.dot_dimension_numbers<[1], [0], [0], [1], [0, 0, 1, 1], [], []>} : vector<16x16xf32>, vector<16x16xf32>, vector<16x16xf32> -> vector<16x16xf32>
    %62 = vector.extract_strided_slice %42 {offsets = [0, 16], sizes = [16, 16], strides = [1, 1]} : vector<16x32xf32> to vector<16x16xf32>
    %63 = vector.extract_strided_slice %43 {offsets = [0, 16], sizes = [16, 16], strides = [1, 1]} : vector<16x32xf32> to vector<16x16xf32>
    %64 = vector.extract_strided_slice %44 {offsets = [0, 16], sizes = [16, 16], strides = [1, 1]} : vector<16x32xf32> to vector<16x16xf32>
    %65 = tpu.transpose %63, [1, 0] : vector<16x16xf32> -> vector<16x16xf32>
    %cst_27 = arith.constant dense<0.000000e+00> : vector<16x16xf32>
    %66 = tpu.matmul %62, %65, %cst_27 {dimension_numbers = #tpu.dot_dimension_numbers<[1], [0], [0], [1], [0, 0, 1, 1], [], []>} : vector<16x16xf32>, vector<16x16xf32>, vector<16x16xf32> -> vector<16x16xf32>
    %67 = arith.addf %66, %25 : vector<16x16xf32>
    %cst_28 = arith.constant dense<0xFF800000> : vector<16xf32>
    %68 = vector.multi_reduction <maximumf>, %67, %cst_28 [1] : vector<16x16xf32> to vector<16xf32>
    %69 = vector.shape_cast %68 : vector<16xf32> to vector<16x1xf32>
    %70 = vector.broadcast %69 : vector<16x1xf32> to vector<16x16xf32>
    %71 = arith.subf %67, %70 : vector<16x16xf32>
    %72 = math.exp %71 : vector<16x16xf32>
    %cst_29 = arith.constant dense<0.000000e+00> : vector<16xf32>
    %73 = vector.multi_reduction <add>, %72, %cst_29 [1] : vector<16x16xf32> to vector<16xf32>
    %74 = vector.shape_cast %73 : vector<16xf32> to vector<16x1xf32>
    %75 = tpu.reciprocal %74 {approx = true} : vector<16x1xf32> -> vector<16x1xf32>
    %76 = vector.broadcast %75 : vector<16x1xf32> to vector<16x16xf32>
    %77 = arith.mulf %72, %76 : vector<16x16xf32>
    %cst_30 = arith.constant dense<0.000000e+00> : vector<16x16xf32>
    %78 = tpu.matmul %77, %64, %cst_30 {dimension_numbers = #tpu.dot_dimension_numbers<[1], [0], [0], [1], [0, 0, 1, 1], [], []>} : vector<16x16xf32>, vector<16x16xf32>, vector<16x16xf32> -> vector<16x16xf32>
    %79 = tpu.concatenate %61, %78 in 1 : vector<16x16xf32>, vector<16x16xf32> -> vector<16x32xf32>
    %80 = arith.truncf %79 : vector<16x32xf32> to vector<16x32xbf16>
    %c0_31 = arith.constant 0 : index
    %c0_32 = arith.constant 0 : index
    %c0_33 = arith.constant 0 : index
    %81 = vector.load %arg4[%c0_31, %c0_32, %c0_33] : memref<2x32x32xbf16, #tpu.memory_space<vmem>>, vector<1x32x32xbf16>
    %82 = vector.shape_cast %81 : vector<1x32x32xbf16> to vector<32x32xbf16>
    %cst_34 = arith.constant dense<0.000000e+00> : vector<16x32xf32>
    %83 = tpu.matmul %80, %82, %cst_34 {dimension_numbers = #tpu.dot_dimension_numbers<[1], [0], [0], [1], [0, 0, 1, 1], [], []>} : vector<16x32xbf16>, vector<32x32xbf16>, vector<16x32xf32> -> vector<16x32xf32>
    %84 = vector.broadcast %27 : vector<1x32xf32> to vector<16x32xf32>
    %85 = arith.addf %83, %84 : vector<16x32xf32>
    %86 = arith.addf %85, %24 : vector<16x32xf32>
    %cst_35 = arith.constant dense<0.000000e+00> : vector<16xf32>
    %87 = vector.multi_reduction <add>, %86, %cst_35 [1] : vector<16x32xf32> to vector<16xf32>
    %88 = vector.shape_cast %87 : vector<16xf32> to vector<16x1xf32>
    %cst_36 = arith.constant 3.200000e+01 : f32
    %89 = vector.broadcast %cst_36 : f32 to vector<16x1xf32>
    %90 = arith.divf %88, %89 : vector<16x1xf32>
    %91 = vector.broadcast %90 : vector<16x1xf32> to vector<16x32xf32>
    %92 = arith.subf %86, %91 : vector<16x32xf32>
    %93 = arith.mulf %92, %92 : vector<16x32xf32>
    %cst_37 = arith.constant dense<0.000000e+00> : vector<16xf32>
    %94 = vector.multi_reduction <add>, %93, %cst_37 [1] : vector<16x32xf32> to vector<16xf32>
    %95 = vector.shape_cast %94 : vector<16xf32> to vector<16x1xf32>
    %cst_38 = arith.constant 3.200000e+01 : f32
    %96 = vector.broadcast %cst_38 : f32 to vector<16x1xf32>
    %97 = arith.divf %95, %96 : vector<16x1xf32>
    %98 = vector.broadcast %90 : vector<16x1xf32> to vector<16x32xf32>
    %99 = arith.subf %86, %98 : vector<16x32xf32>
    %cst_39 = arith.constant 9.99999974E-6 : f32
    %100 = vector.broadcast %cst_39 : f32 to vector<16x1xf32>
    %101 = arith.addf %97, %100 : vector<16x1xf32>
    %102 = math.rsqrt %101 : vector<16x1xf32>
    %103 = vector.broadcast %102 : vector<16x1xf32> to vector<16x32xf32>
    %104 = arith.mulf %99, %103 : vector<16x32xf32>
    %105 = vector.broadcast %30 : vector<1x32xf32> to vector<16x32xf32>
    %106 = arith.mulf %104, %105 : vector<16x32xf32>
    %107 = vector.broadcast %31 : vector<1x32xf32> to vector<16x32xf32>
    %108 = arith.addf %106, %107 : vector<16x32xf32>
    %109 = arith.truncf %108 : vector<16x32xf32> to vector<16x32xbf16>
    %c0_40 = arith.constant 0 : index
    %c0_41 = arith.constant 0 : index
    %c0_42 = arith.constant 0 : index
    %110 = vector.load %arg5[%c0_40, %c0_41, %c0_42] : memref<2x32x64xbf16, #tpu.memory_space<vmem>>, vector<1x32x64xbf16>
    %111 = vector.shape_cast %110 : vector<1x32x64xbf16> to vector<32x64xbf16>
    %cst_43 = arith.constant dense<0.000000e+00> : vector<16x64xf32>
    %112 = tpu.matmul %109, %111, %cst_43 {dimension_numbers = #tpu.dot_dimension_numbers<[1], [0], [0], [1], [0, 0, 1, 1], [], []>} : vector<16x32xbf16>, vector<32x64xbf16>, vector<16x64xf32> -> vector<16x64xf32>
    %113 = vector.broadcast %28 : vector<1x64xf32> to vector<16x64xf32>
    %114 = arith.addf %112, %113 : vector<16x64xf32>
    %cst_44 = arith.constant 5.000000e-01 : f32
    %115 = vector.broadcast %cst_44 : f32 to vector<16x64xf32>
    %116 = arith.mulf %115, %114 : vector<16x64xf32>
    %cst_45 = arith.constant 4.471500e-02 : f32
    %117 = vector.broadcast %cst_45 : f32 to vector<16x64xf32>
    %118 = arith.mulf %117, %114 : vector<16x64xf32>
    %119 = arith.mulf %118, %114 : vector<16x64xf32>
    %120 = arith.mulf %119, %114 : vector<16x64xf32>
    %121 = arith.addf %114, %120 : vector<16x64xf32>
    %cst_46 = arith.constant 0.797884583 : f32
    %122 = vector.broadcast %cst_46 : f32 to vector<16x64xf32>
    %123 = arith.mulf %122, %121 : vector<16x64xf32>
    %124 = math.tanh %123 : vector<16x64xf32>
    %cst_47 = arith.constant 1.000000e+00 : f32
    %125 = vector.broadcast %cst_47 : f32 to vector<16x64xf32>
    %126 = arith.addf %125, %124 : vector<16x64xf32>
    %127 = arith.mulf %116, %126 : vector<16x64xf32>
    %128 = arith.truncf %127 : vector<16x64xf32> to vector<16x64xbf16>
    %c0_48 = arith.constant 0 : index
    %c0_49 = arith.constant 0 : index
    %c0_50 = arith.constant 0 : index
    %129 = vector.load %arg6[%c0_48, %c0_49, %c0_50] : memref<2x64x32xbf16, #tpu.memory_space<vmem>>, vector<1x64x32xbf16>
    %130 = vector.shape_cast %129 : vector<1x64x32xbf16> to vector<64x32xbf16>
    %cst_51 = arith.constant dense<0.000000e+00> : vector<16x32xf32>
    %131 = tpu.matmul %128, %130, %cst_51 {dimension_numbers = #tpu.dot_dimension_numbers<[1], [0], [0], [1], [0, 0, 1, 1], [], []>} : vector<16x64xbf16>, vector<64x32xbf16>, vector<16x32xf32> -> vector<16x32xf32>
    %132 = vector.broadcast %29 : vector<1x32xf32> to vector<16x32xf32>
    %133 = arith.addf %131, %132 : vector<16x32xf32>
    %134 = arith.addf %133, %108 : vector<16x32xf32>
    %cst_52 = arith.constant dense<0.000000e+00> : vector<16xf32>
    %135 = vector.multi_reduction <add>, %134, %cst_52 [1] : vector<16x32xf32> to vector<16xf32>
    %136 = vector.shape_cast %135 : vector<16xf32> to vector<16x1xf32>
    %cst_53 = arith.constant 3.200000e+01 : f32
    %137 = vector.broadcast %cst_53 : f32 to vector<16x1xf32>
    %138 = arith.divf %136, %137 : vector<16x1xf32>
    %139 = vector.broadcast %138 : vector<16x1xf32> to vector<16x32xf32>
    %140 = arith.subf %134, %139 : vector<16x32xf32>
    %141 = arith.mulf %140, %140 : vector<16x32xf32>
    %cst_54 = arith.constant dense<0.000000e+00> : vector<16xf32>
    %142 = vector.multi_reduction <add>, %141, %cst_54 [1] : vector<16x32xf32> to vector<16xf32>
    %143 = vector.shape_cast %142 : vector<16xf32> to vector<16x1xf32>
    %cst_55 = arith.constant 3.200000e+01 : f32
    %144 = vector.broadcast %cst_55 : f32 to vector<16x1xf32>
    %145 = arith.divf %143, %144 : vector<16x1xf32>
    %146 = vector.broadcast %138 : vector<16x1xf32> to vector<16x32xf32>
    %147 = arith.subf %134, %146 : vector<16x32xf32>
    %cst_56 = arith.constant 9.99999974E-6 : f32
    %148 = vector.broadcast %cst_56 : f32 to vector<16x1xf32>
    %149 = arith.addf %145, %148 : vector<16x1xf32>
    %150 = math.rsqrt %149 : vector<16x1xf32>
    %151 = vector.broadcast %150 : vector<16x1xf32> to vector<16x32xf32>
    %152 = arith.mulf %147, %151 : vector<16x32xf32>
    %153 = vector.broadcast %32 : vector<1x32xf32> to vector<16x32xf32>
    %154 = arith.mulf %152, %153 : vector<16x32xf32>
    %155 = vector.broadcast %33 : vector<1x32xf32> to vector<16x32xf32>
    %156 = arith.addf %154, %155 : vector<16x32xf32>
    %c10 = arith.constant 10 : index
    %c0_57 = arith.constant 0 : index
    %157 = vector.load %arg2[%c10, %c0_57] : memref<18x128xf32, #tpu.memory_space<vmem>>, vector<1x96xf32>
    %c11 = arith.constant 11 : index
    %c0_58 = arith.constant 0 : index
    %158 = vector.load %arg2[%c11, %c0_58] : memref<18x128xf32, #tpu.memory_space<vmem>>, vector<1x32xf32>
    %c12 = arith.constant 12 : index
    %c0_59 = arith.constant 0 : index
    %159 = vector.load %arg2[%c12, %c0_59] : memref<18x128xf32, #tpu.memory_space<vmem>>, vector<1x64xf32>
    %c13 = arith.constant 13 : index
    %c0_60 = arith.constant 0 : index
    %160 = vector.load %arg2[%c13, %c0_60] : memref<18x128xf32, #tpu.memory_space<vmem>>, vector<1x32xf32>
    %c14 = arith.constant 14 : index
    %c0_61 = arith.constant 0 : index
    %161 = vector.load %arg2[%c14, %c0_61] : memref<18x128xf32, #tpu.memory_space<vmem>>, vector<1x32xf32>
    %c15 = arith.constant 15 : index
    %c0_62 = arith.constant 0 : index
    %162 = vector.load %arg2[%c15, %c0_62] : memref<18x128xf32, #tpu.memory_space<vmem>>, vector<1x32xf32>
    %c16 = arith.constant 16 : index
    %c0_63 = arith.constant 0 : index
    %163 = vector.load %arg2[%c16, %c0_63] : memref<18x128xf32, #tpu.memory_space<vmem>>, vector<1x32xf32>
    %c17 = arith.constant 17 : index
    %c0_64 = arith.constant 0 : index
    %164 = vector.load %arg2[%c17, %c0_64] : memref<18x128xf32, #tpu.memory_space<vmem>>, vector<1x32xf32>
    %165 = arith.truncf %156 : vector<16x32xf32> to vector<16x32xbf16>
    %c1_65 = arith.constant 1 : index
    %c0_66 = arith.constant 0 : index
    %c0_67 = arith.constant 0 : index
    %166 = vector.load %arg3[%c1_65, %c0_66, %c0_67] : memref<2x32x96xbf16, #tpu.memory_space<vmem>>, vector<1x32x96xbf16>
    %167 = vector.shape_cast %166 : vector<1x32x96xbf16> to vector<32x96xbf16>
    %cst_68 = arith.constant dense<0.000000e+00> : vector<16x96xf32>
    %168 = tpu.matmul %165, %167, %cst_68 {dimension_numbers = #tpu.dot_dimension_numbers<[1], [0], [0], [1], [0, 0, 1, 1], [], []>} : vector<16x32xbf16>, vector<32x96xbf16>, vector<16x96xf32> -> vector<16x96xf32>
    %169 = vector.broadcast %157 : vector<1x96xf32> to vector<16x96xf32>
    %170 = arith.addf %168, %169 : vector<16x96xf32>
    %171 = vector.extract_strided_slice %170 {offsets = [0, 0], sizes = [16, 32], strides = [1, 1]} : vector<16x96xf32> to vector<16x32xf32>
    %cst_69 = arith.constant 2.500000e-01 : f32
    %172 = vector.broadcast %cst_69 : f32 to vector<16x32xf32>
    %173 = arith.mulf %171, %172 : vector<16x32xf32>
    %174 = vector.extract_strided_slice %170 {offsets = [0, 32], sizes = [16, 32], strides = [1, 1]} : vector<16x96xf32> to vector<16x32xf32>
    %175 = vector.extract_strided_slice %170 {offsets = [0, 64], sizes = [16, 32], strides = [1, 1]} : vector<16x96xf32> to vector<16x32xf32>
    %176 = vector.extract_strided_slice %173 {offsets = [0, 0], sizes = [16, 16], strides = [1, 1]} : vector<16x32xf32> to vector<16x16xf32>
    %177 = vector.extract_strided_slice %174 {offsets = [0, 0], sizes = [16, 16], strides = [1, 1]} : vector<16x32xf32> to vector<16x16xf32>
    %178 = vector.extract_strided_slice %175 {offsets = [0, 0], sizes = [16, 16], strides = [1, 1]} : vector<16x32xf32> to vector<16x16xf32>
    %179 = tpu.transpose %177, [1, 0] : vector<16x16xf32> -> vector<16x16xf32>
    %cst_70 = arith.constant dense<0.000000e+00> : vector<16x16xf32>
    %180 = tpu.matmul %176, %179, %cst_70 {dimension_numbers = #tpu.dot_dimension_numbers<[1], [0], [0], [1], [0, 0, 1, 1], [], []>} : vector<16x16xf32>, vector<16x16xf32>, vector<16x16xf32> -> vector<16x16xf32>
    %181 = arith.addf %180, %25 : vector<16x16xf32>
    %cst_71 = arith.constant dense<0xFF800000> : vector<16xf32>
    %182 = vector.multi_reduction <maximumf>, %181, %cst_71 [1] : vector<16x16xf32> to vector<16xf32>
    %183 = vector.shape_cast %182 : vector<16xf32> to vector<16x1xf32>
    %184 = vector.broadcast %183 : vector<16x1xf32> to vector<16x16xf32>
    %185 = arith.subf %181, %184 : vector<16x16xf32>
    %186 = math.exp %185 : vector<16x16xf32>
    %cst_72 = arith.constant dense<0.000000e+00> : vector<16xf32>
    %187 = vector.multi_reduction <add>, %186, %cst_72 [1] : vector<16x16xf32> to vector<16xf32>
    %188 = vector.shape_cast %187 : vector<16xf32> to vector<16x1xf32>
    %189 = tpu.reciprocal %188 {approx = true} : vector<16x1xf32> -> vector<16x1xf32>
    %190 = vector.broadcast %189 : vector<16x1xf32> to vector<16x16xf32>
    %191 = arith.mulf %186, %190 : vector<16x16xf32>
    %cst_73 = arith.constant dense<0.000000e+00> : vector<16x16xf32>
    %192 = tpu.matmul %191, %178, %cst_73 {dimension_numbers = #tpu.dot_dimension_numbers<[1], [0], [0], [1], [0, 0, 1, 1], [], []>} : vector<16x16xf32>, vector<16x16xf32>, vector<16x16xf32> -> vector<16x16xf32>
    %193 = vector.extract_strided_slice %173 {offsets = [0, 16], sizes = [16, 16], strides = [1, 1]} : vector<16x32xf32> to vector<16x16xf32>
    %194 = vector.extract_strided_slice %174 {offsets = [0, 16], sizes = [16, 16], strides = [1, 1]} : vector<16x32xf32> to vector<16x16xf32>
    %195 = vector.extract_strided_slice %175 {offsets = [0, 16], sizes = [16, 16], strides = [1, 1]} : vector<16x32xf32> to vector<16x16xf32>
    %196 = tpu.transpose %194, [1, 0] : vector<16x16xf32> -> vector<16x16xf32>
    %cst_74 = arith.constant dense<0.000000e+00> : vector<16x16xf32>
    %197 = tpu.matmul %193, %196, %cst_74 {dimension_numbers = #tpu.dot_dimension_numbers<[1], [0], [0], [1], [0, 0, 1, 1], [], []>} : vector<16x16xf32>, vector<16x16xf32>, vector<16x16xf32> -> vector<16x16xf32>
    %198 = arith.addf %197, %25 : vector<16x16xf32>
    %cst_75 = arith.constant dense<0xFF800000> : vector<16xf32>
    %199 = vector.multi_reduction <maximumf>, %198, %cst_75 [1] : vector<16x16xf32> to vector<16xf32>
    %200 = vector.shape_cast %199 : vector<16xf32> to vector<16x1xf32>
    %201 = vector.broadcast %200 : vector<16x1xf32> to vector<16x16xf32>
    %202 = arith.subf %198, %201 : vector<16x16xf32>
    %203 = math.exp %202 : vector<16x16xf32>
    %cst_76 = arith.constant dense<0.000000e+00> : vector<16xf32>
    %204 = vector.multi_reduction <add>, %203, %cst_76 [1] : vector<16x16xf32> to vector<16xf32>
    %205 = vector.shape_cast %204 : vector<16xf32> to vector<16x1xf32>
    %206 = tpu.reciprocal %205 {approx = true} : vector<16x1xf32> -> vector<16x1xf32>
    %207 = vector.broadcast %206 : vector<16x1xf32> to vector<16x16xf32>
    %208 = arith.mulf %203, %207 : vector<16x16xf32>
    %cst_77 = arith.constant dense<0.000000e+00> : vector<16x16xf32>
    %209 = tpu.matmul %208, %195, %cst_77 {dimension_numbers = #tpu.dot_dimension_numbers<[1], [0], [0], [1], [0, 0, 1, 1], [], []>} : vector<16x16xf32>, vector<16x16xf32>, vector<16x16xf32> -> vector<16x16xf32>
    %210 = tpu.concatenate %192, %209 in 1 : vector<16x16xf32>, vector<16x16xf32> -> vector<16x32xf32>
    %211 = arith.truncf %210 : vector<16x32xf32> to vector<16x32xbf16>
    %c1_78 = arith.constant 1 : index
    %c0_79 = arith.constant 0 : index
    %c0_80 = arith.constant 0 : index
    %212 = vector.load %arg4[%c1_78, %c0_79, %c0_80] : memref<2x32x32xbf16, #tpu.memory_space<vmem>>, vector<1x32x32xbf16>
    %213 = vector.shape_cast %212 : vector<1x32x32xbf16> to vector<32x32xbf16>
    %cst_81 = arith.constant dense<0.000000e+00> : vector<16x32xf32>
    %214 = tpu.matmul %211, %213, %cst_81 {dimension_numbers = #tpu.dot_dimension_numbers<[1], [0], [0], [1], [0, 0, 1, 1], [], []>} : vector<16x32xbf16>, vector<32x32xbf16>, vector<16x32xf32> -> vector<16x32xf32>
    %215 = vector.broadcast %158 : vector<1x32xf32> to vector<16x32xf32>
    %216 = arith.addf %214, %215 : vector<16x32xf32>
    %c0_82 = arith.constant 0 : index
    %c0_83 = arith.constant 0 : index
    %217 = vector.load %arg7[%c0_82, %c0_83] : memref<32x8xbf16, #tpu.memory_space<vmem>>, vector<32x8xbf16>
    %cst_84 = arith.constant dense<0.000000e+00> : vector<16x8xf32>
    %218 = tpu.matmul %211, %217, %cst_84 {dimension_numbers = #tpu.dot_dimension_numbers<[1], [0], [0], [1], [0, 0, 1, 1], [], []>} : vector<16x32xbf16>, vector<32x8xbf16>, vector<16x8xf32> -> vector<16x8xf32>
    %219 = arith.truncf %218 : vector<16x8xf32> to vector<16x8xbf16>
    %c0_85 = arith.constant 0 : index
    %c0_86 = arith.constant 0 : index
    %220 = vector.load %arg8[%c0_85, %c0_86] : memref<8x32xbf16, #tpu.memory_space<vmem>>, vector<8x32xbf16>
    %cst_87 = arith.constant dense<0.000000e+00> : vector<16x32xf32>
    %221 = tpu.matmul %219, %220, %cst_87 {dimension_numbers = #tpu.dot_dimension_numbers<[1], [0], [0], [1], [0, 0, 1, 1], [], []>} : vector<16x8xbf16>, vector<8x32xbf16>, vector<16x32xf32> -> vector<16x32xf32>
    %cst_88 = arith.constant 2.000000e+00 : f32
    %222 = vector.broadcast %cst_88 : f32 to vector<16x32xf32>
    %223 = arith.mulf %222, %221 : vector<16x32xf32>
    %224 = arith.addf %216, %223 : vector<16x32xf32>
    %225 = arith.addf %224, %156 : vector<16x32xf32>
    %cst_89 = arith.constant dense<0.000000e+00> : vector<16xf32>
    %226 = vector.multi_reduction <add>, %225, %cst_89 [1] : vector<16x32xf32> to vector<16xf32>
    %227 = vector.shape_cast %226 : vector<16xf32> to vector<16x1xf32>
    %cst_90 = arith.constant 3.200000e+01 : f32
    %228 = vector.broadcast %cst_90 : f32 to vector<16x1xf32>
    %229 = arith.divf %227, %228 : vector<16x1xf32>
    %230 = vector.broadcast %229 : vector<16x1xf32> to vector<16x32xf32>
    %231 = arith.subf %225, %230 : vector<16x32xf32>
    %232 = arith.mulf %231, %231 : vector<16x32xf32>
    %cst_91 = arith.constant dense<0.000000e+00> : vector<16xf32>
    %233 = vector.multi_reduction <add>, %232, %cst_91 [1] : vector<16x32xf32> to vector<16xf32>
    %234 = vector.shape_cast %233 : vector<16xf32> to vector<16x1xf32>
    %cst_92 = arith.constant 3.200000e+01 : f32
    %235 = vector.broadcast %cst_92 : f32 to vector<16x1xf32>
    %236 = arith.divf %234, %235 : vector<16x1xf32>
    %237 = vector.broadcast %229 : vector<16x1xf32> to vector<16x32xf32>
    %238 = arith.subf %225, %237 : vector<16x32xf32>
    %cst_93 = arith.constant 9.99999974E-6 : f32
    %239 = vector.broadcast %cst_93 : f32 to vector<16x1xf32>
    %240 = arith.addf %236, %239 : vector<16x1xf32>
    %241 = math.rsqrt %240 : vector<16x1xf32>
    %242 = vector.broadcast %241 : vector<16x1xf32> to vector<16x32xf32>
    %243 = arith.mulf %238, %242 : vector<16x32xf32>
    %244 = vector.broadcast %161 : vector<1x32xf32> to vector<16x32xf32>
    %245 = arith.mulf %243, %244 : vector<16x32xf32>
    %246 = vector.broadcast %162 : vector<1x32xf32> to vector<16x32xf32>
    %247 = arith.addf %245, %246 : vector<16x32xf32>
    %248 = arith.truncf %247 : vector<16x32xf32> to vector<16x32xbf16>
    %c1_94 = arith.constant 1 : index
    %c0_95 = arith.constant 0 : index
    %c0_96 = arith.constant 0 : index
    %249 = vector.load %arg5[%c1_94, %c0_95, %c0_96] : memref<2x32x64xbf16, #tpu.memory_space<vmem>>, vector<1x32x64xbf16>
    %250 = vector.shape_cast %249 : vector<1x32x64xbf16> to vector<32x64xbf16>
    %cst_97 = arith.constant dense<0.000000e+00> : vector<16x64xf32>
    %251 = tpu.matmul %248, %250, %cst_97 {dimension_numbers = #tpu.dot_dimension_numbers<[1], [0], [0], [1], [0, 0, 1, 1], [], []>} : vector<16x32xbf16>, vector<32x64xbf16>, vector<16x64xf32> -> vector<16x64xf32>
    %252 = vector.broadcast %159 : vector<1x64xf32> to vector<16x64xf32>
    %253 = arith.addf %251, %252 : vector<16x64xf32>
    %cst_98 = arith.constant 5.000000e-01 : f32
    %254 = vector.broadcast %cst_98 : f32 to vector<16x64xf32>
    %255 = arith.mulf %254, %253 : vector<16x64xf32>
    %cst_99 = arith.constant 4.471500e-02 : f32
    %256 = vector.broadcast %cst_99 : f32 to vector<16x64xf32>
    %257 = arith.mulf %256, %253 : vector<16x64xf32>
    %258 = arith.mulf %257, %253 : vector<16x64xf32>
    %259 = arith.mulf %258, %253 : vector<16x64xf32>
    %260 = arith.addf %253, %259 : vector<16x64xf32>
    %cst_100 = arith.constant 0.797884583 : f32
    %261 = vector.broadcast %cst_100 : f32 to vector<16x64xf32>
    %262 = arith.mulf %261, %260 : vector<16x64xf32>
    %263 = math.tanh %262 : vector<16x64xf32>
    %cst_101 = arith.constant 1.000000e+00 : f32
    %264 = vector.broadcast %cst_101 : f32 to vector<16x64xf32>
    %265 = arith.addf %264, %263 : vector<16x64xf32>
    %266 = arith.mulf %255, %265 : vector<16x64xf32>
    %267 = arith.truncf %266 : vector<16x64xf32> to vector<16x64xbf16>
    %c1_102 = arith.constant 1 : index
    %c0_103 = arith.constant 0 : index
    %c0_104 = arith.constant 0 : index
    %268 = vector.load %arg6[%c1_102, %c0_103, %c0_104] : memref<2x64x32xbf16, #tpu.memory_space<vmem>>, vector<1x64x32xbf16>
    %269 = vector.shape_cast %268 : vector<1x64x32xbf16> to vector<64x32xbf16>
    %cst_105 = arith.constant dense<0.000000e+00> : vector<16x32xf32>
    %270 = tpu.matmul %267, %269, %cst_105 {dimension_numbers = #tpu.dot_dimension_numbers<[1], [0], [0], [1], [0, 0, 1, 1], [], []>} : vector<16x64xbf16>, vector<64x32xbf16>, vector<16x32xf32> -> vector<16x32xf32>
    %271 = vector.broadcast %160 : vector<1x32xf32> to vector<16x32xf32>
    %272 = arith.addf %270, %271 : vector<16x32xf32>
    %273 = arith.addf %272, %247 : vector<16x32xf32>
    %cst_106 = arith.constant dense<0.000000e+00> : vector<16xf32>
    %274 = vector.multi_reduction <add>, %273, %cst_106 [1] : vector<16x32xf32> to vector<16xf32>
    %275 = vector.shape_cast %274 : vector<16xf32> to vector<16x1xf32>
    %cst_107 = arith.constant 3.200000e+01 : f32
    %276 = vector.broadcast %cst_107 : f32 to vector<16x1xf32>
    %277 = arith.divf %275, %276 : vector<16x1xf32>
    %278 = vector.broadcast %277 : vector<16x1xf32> to vector<16x32xf32>
    %279 = arith.subf %273, %278 : vector<16x32xf32>
    %280 = arith.mulf %279, %279 : vector<16x32xf32>
    %cst_108 = arith.constant dense<0.000000e+00> : vector<16xf32>
    %281 = vector.multi_reduction <add>, %280, %cst_108 [1] : vector<16x32xf32> to vector<16xf32>
    %282 = vector.shape_cast %281 : vector<16xf32> to vector<16x1xf32>
    %cst_109 = arith.constant 3.200000e+01 : f32
    %283 = vector.broadcast %cst_109 : f32 to vector<16x1xf32>
    %284 = arith.divf %282, %283 : vector<16x1xf32>
    %285 = vector.broadcast %277 : vector<16x1xf32> to vector<16x32xf32>
    %286 = arith.subf %273, %285 : vector<16x32xf32>
    %cst_110 = arith.constant 9.99999974E-6 : f32
    %287 = vector.broadcast %cst_110 : f32 to vector<16x1xf32>
    %288 = arith.addf %284, %287 : vector<16x1xf32>
    %289 = math.rsqrt %288 : vector<16x1xf32>
    %290 = vector.broadcast %289 : vector<16x1xf32> to vector<16x32xf32>
    %291 = arith.mulf %286, %290 : vector<16x32xf32>
    %292 = vector.broadcast %163 : vector<1x32xf32> to vector<16x32xf32>
    %293 = arith.mulf %291, %292 : vector<16x32xf32>
    %294 = vector.broadcast %164 : vector<1x32xf32> to vector<16x32xf32>
    %295 = arith.addf %293, %294 : vector<16x32xf32>
    %c0_111 = arith.constant 0 : index
    %c0_112 = arith.constant 0 : index
    %296 = vector.load %arg9[%c0_111, %c0_112] : memref<16x32xf32, #tpu.memory_space<vmem>>, vector<16x32xf32>
    tpu.vector_store %arg9[%c0_111, %c0_112], %295 {strides = array<i32>} : memref<16x32xf32, #tpu.memory_space<vmem>>, vector<16x32xf32>,
    return
  }
}

</mosaic_0001>

<bundles_post_ra>
// kernel: bi_encoder_forward.1
= control target key start
LH: loop header
LB: loop body
LE: loop exit
PB: predicated region body
PF: predicated region fallthrough
CT: control target
= control target key end

     0   :  { %vm37_vm0 = vcmask 261120   ;;  %v1432_v4 = vmov 32.0   ;;  %s1433_s22 = smov 96   ;;  %s1434_s23 = smov 64   ;;  %vm148_vm8 = vcmask 130048   ;;  %vm519_vm15 = vcmask 523264   ;;  %s1779_s0 = inlined_call_operand.vmem [shape: f32[16,32], index: 0, kind: input, shape index: {}]   ;;  %s1780_s2 = inlined_call_operand.vmem [shape: f32[18,128], index: 2, kind: input, shape index: {}]   ;;  %s1781_s3 = inlined_call_operand.vmem [shape: bf16[2,32,96], index: 3, kind: input, shape index: {}]   ;;  %s1782_s1 = inlined_call_operand.vmem [shape: f32[16,16], index: 1, kind: input, shape index: {}]   ;;  %s1783_s4 = inlined_call_operand.vmem [shape: bf16[2,32,32], index: 4, kind: input, shape index: {}]   ;;  %s1784_s5 = inlined_call_operand.vmem [shape: bf16[2,32,64], index: 5, kind: input, shape index: {}]   ;;  %s1785_s6 = inlined_call_operand.vmem [shape: bf16[2,64,32], index: 6, kind: input, shape index: {}]   ;;  %s1786_s7 = inlined_call_operand.vmem [shape: bf16[32,8], index: 7, kind: input, shape index: {}]   ;;  %s1787_s8 = inlined_call_operand.vmem [shape: bf16[8,32], index: 8, kind: input, shape index: {}]   ;;  %s1788_s9 = inlined_call_operand.vmem [shape: f32[16,32], index: 9, kind: output, shape index: {}]  }
   0x1   :  { %v33_v0 = vld [vmem:[%s1779_s0] sm:$0xff]  ;;  %v34_v2 = vld [vmem:[%s1779_s0 + $0x8] sm:$0xff]  ;;  %1370 = vrcp.f32 %v1432_v4  ;;  %s1435_s24 = smov 112   ;;  %s1436_s29 = smov 80  }
   0x2   :  { %v38_v1 = vsel %vm37_vm0, %v33_v0, 0.0  ;;  %v41_v3 = vsel %vm37_vm0, %v34_v2, 0.0  ;;  %v1290_v21 = vld [vmem:[%s1781_s3 + $0x8] sm:$0xff]  ;;  %v1289_v23 = vld [vmem:[%s1781_s3] sm:$0xff]  ;;  %s1438_s11 = smov 16  }
   0x3   :  { %39 = vadd.xlane.f32.xlu0 %v38_v1  ;;  %132 = vmatpush.bf16.msra.mxu0 %v1290_v21  ;;  %v1352_v42 = vld [vmem:[%s1780_s2] ss:$0 sm:$0xff]  ;;  %v1353_v47 = vld [vmem:[%s1780_s2 + $0x1] ss:$0 sm:$0xff]  ;;  %v1354_v53 = vld [vmem:[%s1780_s2 + $0x2] ss:$0 sm:$0xff] }
   0x4   :  { %v1539_v1 = vld [vmem:[%s1782_s1] sm:$0xff] }
   0x7   :  { %v1371_v5 = vpop.eup %1370  ;;  %133 = vmatpush.bf16.msra.mxu0 %v1289_v23 }
   0x8   :  { %v45_v6 = vmul.f32 32.0, %v1371_v5  ;;  %vm49_vm1 = vweird.f32 %v1371_v5 }
   0xa   :  { %v46_v7 = vsub.f32 1.0, %v45_v6 }
   0xb   :  { %42 = vadd.xlane.f32.xlu0 %v41_v3 }
   0xc   :  { %v47_v8 = vmul.f32 %v1371_v5, %v46_v7 }
   0xe   :  { %v48_v9 = vadd.f32 %v1371_v5, %v47_v8 }
  0x10   :  { %v1497_v10 = vsel %vm49_vm1, %v1371_v5, %v48_v9  ;;  %v1546_v5 = vld [vmem:[%s1782_s1 + $0x8] sm:$0xff]  ;;  %s1437_s1 = smov 48  }
  0x76   :  { %v40_v11 = vpop.xlane.xlu0 %39 }
  0x77   :  { %v51_v12 = vmul.f32 %v1497_v10, %v40_v11 }
  0x79   :  { %v53_v13 = vsub.f32 %v33_v0, %v51_v12 }
  0x7b   :  { %v55_v14 = vmul.f32 %v53_v13, %v53_v13 }
  0x7d   :  { %v57_v15 = vsel %vm37_vm0, %v55_v14, 0.0 }
  0x7e   :  { %58 = vadd.xlane.f32.xlu1 %v57_v15  ;;  %v43_v16 = vpop.xlane.xlu0 %42 }
  0x7f   :  { %v52_v17 = vmul.f32 %v1497_v10, %v43_v16 }
  0x81   :  { %v54_v18 = vsub.f32 %v34_v2, %v52_v17 }
  0x83   :  { %v56_v19 = vmul.f32 %v54_v18, %v54_v18 }
  0x85   :  { %v60_v20 = vsel %vm37_vm0, %v56_v19, 0.0 }
  0x86   :  { %61 = vadd.xlane.f32.xlu1 %v60_v20 }
  0xf1   :  { %v59_v22 = vpop.xlane.xlu1 %58 }
  0xf2   :  { %v63_v24 = vmul.f32 %v59_v22, %v1497_v10 }
  0xf4   :  { %v65_v25 = vadd.f32 1e-05, %v63_v24 }
  0xf6   :  { %1372 = vrsqrt.f32 %v65_v25  ;;  %vm73_vm3 = vweird.f32 %v65_v25 }
  0xf9   :  { %v62_v26 = vpop.xlane.xlu1 %61 }
  0xfa   :  { %v64_v27 = vmul.f32 %v62_v26, %v1497_v10 }
  0xfc   :  { %v1373_v28 = vpop.eup %1372  ;;  %v66_v29 = vadd.f32 1e-05, %v64_v27 }
  0xfd   :  { %v68_v30 = vmul.f32 %v1373_v28, %v65_v25  ;;  %vm74_vm2 = vweird.f32 %v1373_v28 }
  0xfe   :  { %1374 = vrsqrt.f32 %v66_v29  ;;  %vm75_vm4 = vmor %vm73_vm3, %vm74_vm2  ;;  %vm83_vm6 = vweird.f32 %v66_v29 }
  0xff   :  { %v69_v31 = vmul.f32 %v1373_v28, %v68_v30 }
 0x101   :  { %v70_v32 = vmul.f32 0.5, %v69_v31 }
 0x103   :  { %v71_v33 = vsub.f32 1.5, %v70_v32 }
 0x104   :  { %v1375_v34 = vpop.eup %1374 }
 0x105   :  { %v72_v35 = vmul.f32 %v1373_v28, %v71_v33  ;;  %v78_v36 = vmul.f32 %v1375_v34, %v66_v29  ;;  %vm84_vm5 = vweird.f32 %v1375_v34 }
 0x106   :  { %vm85_vm7 = vmor %vm83_vm6, %vm84_vm5 }
 0x107   :  { %v79_v37 = vmul.f32 %v1375_v34, %v78_v36  ;;  %v76_v38 = vsel %vm75_vm4, %v1373_v28, %v72_v35 }
 0x108   :  { %v87_v41 = vmul.f32 %v76_v38, %v53_v13 }
 0x109   :  { %v80_v39 = vmul.f32 0.5, %v79_v37 }
 0x10a   :  { %v90_v46 = vmul.f32 %v1352_v42, %v87_v41 }
 0x10b   :  { %v81_v40 = vsub.f32 1.5, %v80_v39 }
 0x10c   :  { %v1517_v49 = vadd.f32 %v1353_v47, %v90_v46 }
 0x10d   :  { %v82_v43 = vmul.f32 %v1375_v34, %v81_v40 }
 0x10f   :  { %v86_v44 = vsel %vm85_vm7, %v1375_v34, %v82_v43  ;;  %vm909_vm7 = vcmask 1043456  }
 0x110   :  { %v88_v45 = vmul.f32 %v86_v44, %v54_v18 }
 0x112   :  { %v91_v48 = vmul.f32 %v1352_v42, %v88_v45 }
 0x114   :  { %v1519_v50 = vadd.f32 %v1353_v47, %v91_v48 }
 0x116   :  { %v105_v51 = vpack.c.bf16 %v1519_v50, %v1517_v49 }
 0x118   :  { %1155 = vmatmul.msk.bf16.vlgmr.msra.gmra.mxu0 %vm37_vm0, %v105_v51 }
 0x195   :  { %v135_v52 = vpop.f32.mrf.mxu0 }
 0x196   :  { %v136_v56 = vadd.f32 %v1354_v53, %v135_v52 }
 0x198   :  { %v140_v58 = vmul.f32 0.25, %v136_v56 }
 0x19d   :  { %v137_v54 = vpop.f32.mrf.mxu0 }
 0x19e   :  { %v138_v55 = vadd.f32 %v1354_v53, %v137_v54 }
 0x1a0   :  { %146 = vrot.lane.b32.xlu2 %v138_v55, %s1433_s22  ;;  %v1322_v57 = vpack.i.bf16 %v136_v56, %v138_v55  ;;  %v141_v59 = vmul.f32 0.25, %v138_v55 }
 0x1a8   :  { %144 = vrot.lane.b32.xlu2 %v136_v56, %s1433_s22 }
 0x1b0   :  { %1323 = vrot.lane.b32.xlu2 %v1322_v57, %s1434_s23 }
 0x1b8   :  { %239 = vrot.lane.b32.xlu2 %v140_v58, %s1435_s24 }
 0x1c0   :  { %241 = vrot.lane.b32.xlu2 %v141_v59, %s1435_s24 }
 0x1fa   :  { %v147_v60 = vpop.permute.xlu2 %146 }
 0x1fb   :  { %1156 = vmatpush.xpose.msk.msra.mxu1 %vm148_vm8, %v147_v60 }
 0x202   :  { %v145_v61 = vpop.permute.xlu2 %144 }
 0x203   :  { %1157 = vmatpush.xpose.msk.msra.mxu1 %vm148_vm8, %v145_v61 }
 0x206   :  { %1158 = vmatmul.msk.f32.vlgmr.msra.gmra.mxu1 %vm148_vm8, %v140_v58  ;;  %v1292_v58 = vld [vmem:[%s1783_s4 + $0x8] sm:$0xff] }
 0x207   :  { %372 = vmatpush.bf16.msrb.mxu0 %v1292_v58 }
 0x20a   :  { %v1324_v62 = vpop.permute.xlu2 %1323 }
 0x20b   :  { %v1325_v63 = vunpack.i.l.bf16 %v1324_v62  ;;  %v1326_v0 = vunpack.i.h.bf16 %v1324_v62 }
 0x20d   :  { %230 = vmatpush.msra.mxu2 %v1325_v63  ;;  %1311 = vmatpush.msra.mxu3 %v1325_v63  ;;  %v1291_v63 = vld [vmem:[%s1783_s4] sm:$0xff] }
 0x20e   :  { %1159 = vmatmul.msk.f32.gmra.mxu1 %vm148_vm8, %v141_v59  ;;  %373 = vmatpush.bf16.msrb.mxu0 %v1291_v63  ;;  %v1358_v63 = vld [vmem:[%s1780_s2 + $0x4] ss:$0 sm:$0xff] }
 0x20f   :  { %231 = vmatpush.msra.mxu2 %v1326_v0  ;;  %1312 = vmatpush.msra.mxu3 %v1326_v0 }
 0x212   :  { %v240_v9 = vpop.permute.xlu2 %239 }
 0x21a   :  { %v242_v11 = vpop.permute.xlu2 %241 }
 0x283   :  { %v176_v2 = vpop.f32.mrf.mxu1 }
 0x284   :  { %v177_v3 = vadd.f32 %v176_v2, %v1539_v1 }
 0x286   :  { %v182_v4 = vsel %vm148_vm8, %v177_v3, -inf }
 0x287   :  { %183 = vmax.xlane.f32.xlu2 %v182_v4 }
 0x28b   :  { %v179_v6 = vpop.f32.mrf.mxu1 }
 0x28c   :  { %v180_v7 = vadd.f32 %v179_v6, %v1546_v5 }
 0x28e   :  { %v185_v8 = vsel %vm148_vm8, %v180_v7, -inf }
 0x28f   :  { %186 = vmax.xlane.f32.xlu0 %v185_v8  ;;  %v1355_v8 = vld [vmem:[%s1780_s2 + $0x3] ss:$0 sm:$0xff] }
 0x2a3   :  { %245 = vrot.lane.b32.xlu0 %v138_v55, %s1436_s29 }
 0x2fa   :  { %v184_v12 = vpop.xlane.xlu2 %183 }
 0x2fb   :  { %v188_v13 = vsub.f32 %v177_v3, %v184_v12 }
 0x2fd   :  { %v190_v14 = vmul.f32 1.442695, %v188_v13 }
 0x2ff   :  { %1376 = vpow2.f32 %v190_v14 }
 0x302   :  { %v187_v15 = vpop.xlane.xlu0 %186 }
 0x303   :  { %v189_v16 = vsub.f32 %v180_v7, %v187_v15 }
 0x305   :  { %v1377_v17 = vpop.eup %1376  ;;  %v192_v18 = vmul.f32 1.442695, %v189_v16 }
 0x306   :  { %v194_v19 = vsel %vm148_vm8, %v1377_v17, 0.0 }
 0x307   :  { %1378 = vpow2.f32 %v192_v18  ;;  %195 = vadd.xlane.f32.xlu2 %v194_v19 }
 0x30d   :  { %v1379_v20 = vpop.eup %1378 }
 0x30e   :  { %v197_v21 = vsel %vm148_vm8, %v1379_v20, 0.0 }
 0x30f   :  { %198 = vadd.xlane.f32.xlu1 %v197_v21 }
 0x315   :  { %v246_v22 = vpop.permute.xlu0 %245 }
 0x316   :  { %1162 = vmatpush.xpose.msk.msrb.mxu3 %vm148_vm8, %v246_v22 }
 0x31f   :  { %1328 = vrot.lane.b32.xlu2 %v1322_v57, %s1437_s1 }
 0x328   :  { %243 = vrot.lane.b32.xlu1 %v136_v56, %s1436_s29 }
 0x37a   :  { %v196_v23 = vpop.xlane.xlu2 %195 }
 0x37b   :  { %1380 = vrcp.f32 %v196_v23 }
 0x381   :  { %v1381_v24 = vpop.eup %1380 }
 0x382   :  { %v199_v25 = vpop.xlane.xlu1 %198  ;;  %v1329_v26 = vpop.permute.xlu2 %1328  ;;  %v202_v27 = vmul.f32 %v1381_v24, %v1377_v17 }
 0x383   :  { %1382 = vrcp.f32 %v199_v25  ;;  %v1330_v28 = vunpack.i.l.bf16 %v1329_v26  ;;  %v1331_v29 = vunpack.i.h.bf16 %v1329_v26 }
 0x384   :  { %1160 = vmatmul.msk.f32.vlgmr.msra.gmra.mxu2 %vm148_vm8, %v202_v27 }
 0x385   :  { %326 = vmatpush.msrb.mxu2 %v1330_v28  ;;  %v1293_v28 = vld [vmem:[%s1784_s5] sm:$0xff] }
 0x387   :  { %327 = vmatpush.msrb.mxu2 %v1331_v29 }
 0x389   :  { %v1383_v30 = vpop.eup %1382 }
 0x38a   :  { %v203_v31 = vmul.f32 %v1383_v30, %v1379_v20 }
 0x38c   :  { %1161 = vmatmul.msk.f32.vlgmr.msra.gmra.mxu3 %vm148_vm8, %v203_v31 }
 0x39a   :  { %v244_v32 = vpop.permute.xlu1 %243 }
 0x39b   :  { %1163 = vmatpush.xpose.msk.msrb.mxu3 %vm148_vm8, %v244_v32 }
 0x39e   :  { %1164 = vmatmul.msk.f32.vlgmr.msrb.gmra.mxu3 %vm148_vm8, %v240_v9 }
 0x3a6   :  { %1165 = vmatmul.msk.f32.gmra.mxu3 %vm148_vm8, %v242_v11 }
 0x407   :  { %v233_v59 = vpop.f32.mrf.mxu2 }
 0x40f   :  { %v236_v33 = vpop.f32.mrf.mxu3 }
 0x421   :  { %v272_v34 = vpop.f32.mrf.mxu3 }
 0x422   :  { %v273_v35 = vadd.f32 %v272_v34, %v1539_v1 }
 0x424   :  { %v278_v36 = vsel %vm148_vm8, %v273_v35, -inf }
 0x425   :  { %279 = vmax.xlane.f32.xlu0 %v278_v36 }
 0x429   :  { %v275_v37 = vpop.f32.mrf.mxu3 }
 0x42a   :  { %v276_v38 = vadd.f32 %v275_v37, %v1546_v5 }
 0x42c   :  { %v281_v39 = vsel %vm148_vm8, %v276_v38, -inf }
 0x42d   :  { %282 = vmax.xlane.f32.xlu1 %v281_v39 }
 0x498   :  { %v280_v40 = vpop.xlane.xlu0 %279 }
 0x499   :  { %v284_v41 = vsub.f32 %v273_v35, %v280_v40 }
 0x49b   :  { %v286_v42 = vmul.f32 1.442695, %v284_v41 }
 0x49d   :  { %1384 = vpow2.f32 %v286_v42 }
 0x4a0   :  { %v283_v43 = vpop.xlane.xlu1 %282 }
 0x4a1   :  { %v285_v44 = vsub.f32 %v276_v38, %v283_v43 }
 0x4a3   :  { %v1385_v45 = vpop.eup %1384  ;;  %v288_v46 = vmul.f32 1.442695, %v285_v44 }
 0x4a4   :  { %v290_v47 = vsel %vm148_vm8, %v1385_v45, 0.0 }
 0x4a5   :  { %1386 = vpow2.f32 %v288_v46  ;;  %291 = vadd.xlane.f32.xlu0 %v290_v47  ;;  %v1356_v47 = vld [vmem:[%s1780_s2 + $0x6] ss:$0 sm:$0xff] }
 0x4ab   :  { %v1387_v48 = vpop.eup %1386 }
 0x4ac   :  { %v293_v51 = vsel %vm148_vm8, %v1387_v48, 0.0 }
 0x4ad   :  { %294 = vadd.xlane.f32.xlu1 %v293_v51 }
 0x518   :  { %v292_v52 = vpop.xlane.xlu0 %291 }
 0x519   :  { %1388 = vrcp.f32 %v292_v52 }
 0x51f   :  { %v1389_v53 = vpop.eup %1388 }
 0x520   :  { %v295_v54 = vpop.xlane.xlu1 %294  ;;  %v298_v55 = vmul.f32 %v1389_v53, %v1385_v45 }
 0x521   :  { %1390 = vrcp.f32 %v295_v54  ;;  %v1357_v54 = vld [vmem:[%s1780_s2 + $0x7] ss:$0 sm:$0xff] }
 0x522   :  { %1166 = vmatmul.msk.f32.vlgmr.msrb.gmra.mxu2 %vm148_vm8, %v298_v55 }
 0x527   :  { %v1391_v56 = vpop.eup %1390 }
 0x528   :  { %v299_v57 = vmul.f32 %v1391_v56, %v1387_v48 }
 0x52a   :  { %1167 = vmatmul.msk.f32.gmra.mxu2 %vm148_vm8, %v299_v57 }
 0x5a5   :  { %v329_v60 = vpop.f32.mrf.mxu2 }
 0x5ad   :  { %v332_v61 = vpop.f32.mrf.mxu2 }
 0x5ae   :  { %v1332_v62 = vpack.i.bf16 %v332_v61, %v329_v60  ;;  %v1297_v60 = vld [vmem:[%s1785_s6 + $0x10] sm:$0xff]  ;;  %v1296_v61 = vld [vmem:[%s1785_s6 + $0x8] sm:$0xff] }
 0x5b0   :  { %1333 = vrot.lane.b32.xlu0 %v1332_v62, %s1438_s11  ;;  %v1295_v62 = vld [vmem:[%s1785_s6] sm:$0xff] }
 0x622   :  { %v1334_v0 = vpop.permute.xlu0 %1333 }
 0x623   :  { %v1336_v2 = vunpack.i.h.bf16 %v1334_v0  ;;  %v1335_v3 = vunpack.i.l.bf16 %v1334_v0 }
 0x625   :  { %v344_v4 = vsel %vm148_vm8, %v236_v33, %v1336_v2  ;;  %v343_v6 = vsel %vm148_vm8, %v233_v59, %v1335_v3  ;;  %v1298_v59 = vld [vmem:[%s1785_s6 + $0x18] sm:$0xff] }
 0x626   :  { %v345_v7 = vpack.c.bf16 %v344_v4, %v343_v6  ;;  %527 = vmatpush.bf16.msra.mxu3 %v1298_v59 }
 0x628   :  { %1176 = vmatmul.msk.bf16.vlgmr.msrb.gmra.mxu0 %vm37_vm0, %v345_v7 }
 0x62a   :  { %528 = vmatpush.bf16.msra.mxu3 %v1297_v60 }
 0x62e   :  { %529 = vmatpush.bf16.msra.mxu3 %v1296_v61 }
 0x632   :  { %530 = vmatpush.bf16.msra.mxu3 %v1295_v62 }
 0x6a5   :  { %v375_v9 = vpop.f32.mrf.mxu0 }
 0x6a6   :  { %v376_v11 = vadd.f32 %v1355_v8, %v375_v9 }
 0x6a8   :  { %v380_v12 = vadd.f32 %v376_v11, %v1517_v49 }
 0x6aa   :  { %v382_v13 = vsel %vm37_vm0, %v380_v12, 0.0 }
 0x6ab   :  { %383 = vadd.xlane.f32.xlu1 %v382_v13 }
 0x6ad   :  { %v377_v14 = vpop.f32.mrf.mxu0 }
 0x6ae   :  { %v378_v15 = vadd.f32 %v1355_v8, %v377_v14 }
 0x6b0   :  { %v381_v16 = vadd.f32 %v378_v15, %v1519_v50  ;;  %v1294_v50 = vld [vmem:[%s1784_s5 + $0x8] sm:$0xff] }
 0x6b1   :  { %459 = vmatpush.bf16.msrb.mxu1 %v1294_v50 }
 0x6b2   :  { %v385_v17 = vsel %vm37_vm0, %v381_v16, 0.0 }
 0x6b3   :  { %386 = vadd.xlane.f32.xlu1 %v385_v17 }
 0x6b5   :  { %460 = vmatpush.bf16.msrb.mxu1 %v1293_v28 }
 0x71e   :  { %v384_v18 = vpop.xlane.xlu1 %383 }
 0x71f   :  { %v388_v19 = vmul.f32 %v384_v18, %v1497_v10 }
 0x721   :  { %v390_v20 = vsub.f32 %v380_v12, %v388_v19 }
 0x723   :  { %v392_v21 = vmul.f32 %v390_v20, %v390_v20 }
 0x725   :  { %v394_v22 = vsel %vm37_vm0, %v392_v21, 0.0 }
 0x726   :  { %395 = vadd.xlane.f32.xlu2 %v394_v22  ;;  %v387_v23 = vpop.xlane.xlu1 %386 }
 0x727   :  { %v389_v49 = vmul.f32 %v387_v23, %v1497_v10 }
 0x729   :  { %v391_v24 = vsub.f32 %v381_v16, %v389_v49 }
 0x72b   :  { %v393_v25 = vmul.f32 %v391_v24, %v391_v24 }
 0x72d   :  { %v397_v26 = vsel %vm37_vm0, %v393_v25, 0.0  ;;  %v1359_v25 = vld [vmem:[%s1780_s2 + $0x5] ss:$0 sm:$0xff] }
 0x72e   :  { %398 = vadd.xlane.f32.xlu0 %v397_v26 }
 0x799   :  { %v396_v27 = vpop.xlane.xlu2 %395 }
 0x79a   :  { %v400_v29 = vmul.f32 %v396_v27, %v1497_v10 }
 0x79c   :  { %v402_v30 = vadd.f32 1e-05, %v400_v29 }
 0x79e   :  { %1392 = vrsqrt.f32 %v402_v30  ;;  %vm410_vm10 = vweird.f32 %v402_v30 }
 0x7a1   :  { %v399_v31 = vpop.xlane.xlu0 %398 }
 0x7a2   :  { %v401_v32 = vmul.f32 %v399_v31, %v1497_v10 }
 0x7a4   :  { %v1393_v33 = vpop.eup %1392  ;;  %v403_v34 = vadd.f32 1e-05, %v401_v32 }
 0x7a5   :  { %v405_v35 = vmul.f32 %v1393_v33, %v402_v30  ;;  %vm411_vm9 = vweird.f32 %v1393_v33 }
 0x7a6   :  { %1394 = vrsqrt.f32 %v403_v34  ;;  %vm412_vm11 = vmor %vm410_vm10, %vm411_vm9  ;;  %vm420_vm13 = vweird.f32 %v403_v34  ;;  %vm905_vm9 = vcmask 64512  }
 0x7a7   :  { %v406_v36 = vmul.f32 %v1393_v33, %v405_v35 }
 0x7a9   :  { %v407_v37 = vmul.f32 0.5, %v406_v36 }
 0x7ab   :  { %v408_v38 = vsub.f32 1.5, %v407_v37 }
 0x7ac   :  { %v1395_v39 = vpop.eup %1394 }
 0x7ad   :  { %v409_v40 = vmul.f32 %v1393_v33, %v408_v38  ;;  %v415_v41 = vmul.f32 %v1395_v39, %v403_v34  ;;  %vm421_vm12 = vweird.f32 %v1395_v39 }
 0x7ae   :  { %vm422_vm14 = vmor %vm420_vm13, %vm421_vm12 }
 0x7af   :  { %v416_v42 = vmul.f32 %v1395_v39, %v415_v41  ;;  %v413_v43 = vsel %vm412_vm11, %v1393_v33, %v409_v40 }
 0x7b0   :  { %v424_v46 = vmul.f32 %v413_v43, %v390_v20  ;;  %v1300_v43 = vld [vmem:[%s1781_s3 + $0x18] sm:$0xff] }
 0x7b1   :  { %v417_v44 = vmul.f32 0.5, %v416_v42  ;;  %625 = vmatpush.bf16.msra.mxu2 %v1300_v43 }
 0x7b2   :  { %v427_v53 = vmul.f32 %v1356_v47, %v424_v46  ;;  %v1299_v46 = vld [vmem:[%s1781_s3 + $0x10] sm:$0xff] }
 0x7b3   :  { %v418_v45 = vsub.f32 1.5, %v417_v44 }
 0x7b4   :  { %v430_v56 = vadd.f32 %v1357_v54, %v427_v53 }
 0x7b5   :  { %v419_v48 = vmul.f32 %v1395_v39, %v418_v45  ;;  %626 = vmatpush.bf16.msra.mxu2 %v1299_v46 }
 0x7b7   :  { %v423_v51 = vsel %vm422_vm14, %v1395_v39, %v419_v48 }
 0x7b8   :  { %v425_v52 = vmul.f32 %v423_v51, %v391_v24 }
 0x7ba   :  { %v428_v55 = vmul.f32 %v1356_v47, %v425_v52 }
 0x7bc   :  { %v431_v57 = vadd.f32 %v1357_v54, %v428_v55 }
 0x7be   :  { %v432_v58 = vpack.c.bf16 %v431_v57, %v430_v56 }
 0x7c0   :  { %1185 = vmatmul.msk.bf16.vlgmr.msrb.gmra.mxu1 %vm37_vm0, %v432_v58 }
 0x83d   :  { %v462_v0 = vpop.f32.mrf.mxu1 }
 0x83e   :  { %v463_v2 = vadd.f32 %v1358_v63, %v462_v0 }
 0x840   :  { %v469_v3 = vmul.f32 0.044715, %v463_v2  ;;  %v467_v20 = vmul.f32 0.5, %v463_v2 }
 0x842   :  { %v471_v4 = vmul.f32 %v469_v3, %v463_v2 }
 0x844   :  { %v473_v6 = vmul.f32 %v471_v4, %v463_v2 }
 0x845   :  { %v464_v7 = vpop.f32.mrf.mxu1 }
 0x846   :  { %v475_v8 = vadd.f32 %v473_v6, %v463_v2  ;;  %v465_v9 = vadd.f32 %v1358_v63, %v464_v7  ;;  %v1360_v2 = vld [vmem:[%s1780_s2 + $0x8] ss:$0 sm:$0xff]  ;;  %v1361_v7 = vld [vmem:[%s1780_s2 + $0x9] ss:$0 sm:$0xff] }
 0x848   :  { %v470_v11 = vmul.f32 0.044715, %v465_v9  ;;  %v477_v12 = vmul.f32 0.7978846, %v475_v8  ;;  %v468_v21 = vmul.f32 0.5, %v465_v9 }
 0x84a   :  { %v472_v13 = vmul.f32 %v470_v11, %v465_v9  ;;  %1396 = vtanh.f32 %v477_v12 }
 0x84c   :  { %v474_v14 = vmul.f32 %v472_v13, %v465_v9 }
 0x84e   :  { %v476_v15 = vadd.f32 %v474_v14, %v465_v9 }
 0x850   :  { %v478_v16 = vmul.f32 0.7978846, %v476_v15  ;;  %v1397_v17 = vpop.eup %1396  ;;  %v1362_v15 = vld [vmem:[%s1780_s2 + $0xa] ss:$0 sm:$0xff] }
 0x851   :  { %v481_v18 = vadd.f32 1.0, %v1397_v17 }
 0x852   :  { %1398 = vtanh.f32 %v478_v16 }
 0x853   :  { %v483_v23 = vmul.f32 %v481_v18, %v467_v20 }
 0x858   :  { %v1399_v19 = vpop.eup %1398 }
 0x859   :  { %v482_v22 = vadd.f32 1.0, %v1399_v19 }
 0x85b   :  { %v484_v49 = vmul.f32 %v482_v22, %v468_v21 }
 0x85d   :  { %v485_v24 = vpack.c.bf16 %v484_v49, %v483_v23 }
 0x85f   :  { %1202 = vmatmul.msk.bf16.vlgmr.msra.gmra.mxu3 %vm519_vm15, %v485_v24 }
 0x8e2   :  { %v532_v26 = vpop.f32.mrf.mxu3 }
 0x8e3   :  { %v533_v50 = vadd.f32 %v1359_v25, %v532_v26 }
 0x8e5   :  { %v537_v27 = vadd.f32 %v533_v50, %v430_v56 }
 0x8e7   :  { %v539_v28 = vsel %vm37_vm0, %v537_v27, 0.0 }
 0x8e8   :  { %540 = vadd.xlane.f32.xlu1 %v539_v28 }
 0x8ea   :  { %v534_v29 = vpop.f32.mrf.mxu3 }
 0x8eb   :  { %v535_v30 = vadd.f32 %v1359_v25, %v534_v29 }
 0x8ed   :  { %v538_v31 = vadd.f32 %v535_v30, %v431_v57 }
 0x8ef   :  { %v542_v32 = vsel %vm37_vm0, %v538_v31, 0.0 }
 0x8f0   :  { %543 = vadd.xlane.f32.xlu1 %v542_v32 }
 0x95b   :  { %v541_v33 = vpop.xlane.xlu1 %540 }
 0x95c   :  { %v545_v34 = vmul.f32 %v541_v33, %v1497_v10 }
 0x95e   :  { %v547_v35 = vsub.f32 %v537_v27, %v545_v34 }
 0x960   :  { %v549_v36 = vmul.f32 %v547_v35, %v547_v35 }
 0x962   :  { %v551_v37 = vsel %vm37_vm0, %v549_v36, 0.0 }
 0x963   :  { %552 = vadd.xlane.f32.xlu1 %v551_v37  ;;  %v544_v38 = vpop.xlane.xlu1 %543 }
 0x964   :  { %v546_v39 = vmul.f32 %v544_v38, %v1497_v10 }
 0x966   :  { %v548_v40 = vsub.f32 %v538_v31, %v546_v39 }
 0x968   :  { %v550_v41 = vmul.f32 %v548_v40, %v548_v40 }
 0x96a   :  { %v554_v42 = vsel %vm37_vm0, %v550_v41, 0.0 }
 0x96b   :  { %555 = vadd.xlane.f32.xlu1 %v554_v42 }
 0x9d6   :  { %v553_v44 = vpop.xlane.xlu1 %552 }
 0x9d7   :  { %v557_v45 = vmul.f32 %v553_v44, %v1497_v10 }
 0x9d9   :  { %v559_v47 = vadd.f32 1e-05, %v557_v45 }
 0x9db   :  { %1400 = vrsqrt.f32 %v559_v47  ;;  %vm567_vm2 = vweird.f32 %v559_v47 }
 0x9de   :  { %v556_v48 = vpop.xlane.xlu1 %555 }
 0x9df   :  { %v558_v51 = vmul.f32 %v556_v48, %v1497_v10 }
 0x9e1   :  { %v1401_v52 = vpop.eup %1400  ;;  %v560_v53 = vadd.f32 1e-05, %v558_v51 }
 0x9e2   :  { %v562_v54 = vmul.f32 %v1401_v52, %v559_v47  ;;  %vm568_vm1 = vweird.f32 %v1401_v52 }
 0x9e3   :  { %1402 = vrsqrt.f32 %v560_v53  ;;  %vm569_vm3 = vmor %vm567_vm2, %vm568_vm1  ;;  %vm577_vm5 = vweird.f32 %v560_v53 }
 0x9e4   :  { %v563_v55 = vmul.f32 %v1401_v52, %v562_v54 }
 0x9e6   :  { %v564_v56 = vmul.f32 0.5, %v563_v55 }
 0x9e8   :  { %v565_v57 = vsub.f32 1.5, %v564_v56 }
 0x9e9   :  { %v1403_v58 = vpop.eup %1402 }
 0x9ea   :  { %v566_v59 = vmul.f32 %v1401_v52, %v565_v57  ;;  %v572_v60 = vmul.f32 %v1403_v58, %v560_v53  ;;  %vm578_vm4 = vweird.f32 %v1403_v58 }
 0x9eb   :  { %vm579_vm6 = vmor %vm577_vm5, %vm578_vm4 }
 0x9ec   :  { %v573_v61 = vmul.f32 %v1403_v58, %v572_v60  ;;  %v570_v62 = vsel %vm569_vm3, %v1401_v52, %v566_v59 }
 0x9ed   :  { %v581_v3 = vmul.f32 %v570_v62, %v547_v35 }
 0x9ee   :  { %v574_v63 = vmul.f32 0.5, %v573_v61 }
 0x9ef   :  { %v584_v8 = vmul.f32 %v1360_v2, %v581_v3 }
 0x9f0   :  { %v575_v0 = vsub.f32 1.5, %v574_v63 }
 0x9f1   :  { %v1644_v12 = vadd.f32 %v1361_v7, %v584_v8 }
 0x9f2   :  { %v576_v4 = vmul.f32 %v1403_v58, %v575_v0 }
 0x9f4   :  { %v580_v6 = vsel %vm579_vm6, %v1403_v58, %v576_v4 }
 0x9f5   :  { %v582_v9 = vmul.f32 %v580_v6, %v548_v40 }
 0x9f7   :  { %v585_v11 = vmul.f32 %v1360_v2, %v582_v9 }
 0x9f9   :  { %v1646_v13 = vadd.f32 %v1361_v7, %v585_v11 }
 0x9fb   :  { %v597_v14 = vpack.c.bf16 %v1646_v13, %v1644_v12 }
 0x9fd   :  { %1215 = vmatmul.msk.bf16.vlgmr.msra.gmra.mxu2 %vm37_vm0, %v597_v14 }
 0xa80   :  { %v628_v16 = vpop.f32.mrf.mxu2 }
 0xa81   :  { %v629_v17 = vadd.f32 %v1362_v15, %v628_v16 }
 0xa83   :  { %735 = vrot.lane.b32.xlu2 %v629_v17, %s1436_s29  ;;  %v633_v18 = vmul.f32 0.25, %v629_v17 }
 0xa85   :  { %731 = vrot.lane.b32.xlu0 %v633_v18, %s1435_s24 }
 0xa88   :  { %v630_v19 = vpop.f32.mrf.mxu2 }
 0xa89   :  { %v631_v20 = vadd.f32 %v1362_v15, %v630_v19  ;;  %v1304_v19 = vld [vmem:[%s1786_s7 + $0x8] sm:$0xff] }
 0xa8b   :  { %737 = vrot.lane.b32.xlu1 %v631_v20, %s1436_s29  ;;  %637 = vrot.lane.b32.xlu2 %v629_v17, %s1433_s22  ;;  %v1658_v21 = vpack.i.bf16 %v629_v17, %v631_v20  ;;  %v634_v22 = vmul.f32 0.25, %v631_v20 }
 0xa8d   :  { %639 = vrot.lane.b32.xlu0 %v631_v20, %s1433_s22 }
 0xa93   :  { %733 = vrot.lane.b32.xlu1 %v634_v22, %s1435_s24 }
 0xadd   :  { %v736_v49 = vpop.permute.xlu2 %735 }
 0xae5   :  { %v638_v26 = vpop.permute.xlu2 %637 }
 0xaf7   :  { %v732_v23 = vpop.permute.xlu0 %731 }
 0xafd   :  { %v738_v24 = vpop.permute.xlu1 %737 }
 0xafe   :  { %1222 = vmatpush.xpose.msk.msrb.mxu3 %vm148_vm8, %v738_v24 }
 0xaff   :  { %v640_v25 = vpop.permute.xlu0 %639 }
 0xb00   :  { %1216 = vmatpush.xpose.msk.msra.mxu0 %vm148_vm8, %v640_v25  ;;  %1313 = vmatpush.xpose.msk.msra.mxu1 %vm148_vm8, %v640_v25 }
 0xb02   :  { %1223 = vmatpush.xpose.msk.msrb.mxu3 %vm148_vm8, %v736_v49  ;;  %v1303_v49 = vld [vmem:[%s1786_s7] sm:$0xff] }
 0xb04   :  { %1217 = vmatpush.xpose.msk.msra.mxu0 %vm148_vm8, %v638_v26  ;;  %1314 = vmatpush.xpose.msk.msra.mxu1 %vm148_vm8, %v638_v26 }
 0xb05   :  { %1224 = vmatmul.msk.f32.vlgmr.msrb.gmra.mxu3 %vm148_vm8, %v732_v23  ;;  %v734_v50 = vpop.permute.xlu1 %733  ;;  %v1301_v23 = vld [vmem:[%s1783_s4 + $0x10] sm:$0xff] }
 0xb07   :  { %1218 = vmatmul.msk.f32.vlgmr.msra.gmra.mxu0 %vm148_vm8, %v633_v18  ;;  %1219 = vmatmul.msk.f32.vlgmr.msra.gmra.mxu1 %vm148_vm8, %v634_v22  ;;  %v1302_v18 = vld [vmem:[%s1783_s4 + $0x18] sm:$0xff] }
 0xb08   :  { %865 = vmatpush.bf16.msrb.mxu0 %v1302_v18 }
 0xb0c   :  { %866 = vmatpush.bf16.msrb.mxu0 %v1301_v23 }
 0xb0d   :  { %1225 = vmatmul.msk.f32.gmra.mxu3 %vm148_vm8, %v734_v50 }
 0xb84   :  { %v668_v27 = vpop.f32.mrf.mxu0  ;;  %v671_v36 = vpop.f32.mrf.mxu1 }
 0xb85   :  { %v669_v28 = vadd.f32 %v668_v27, %v1539_v1  ;;  %v672_v37 = vadd.f32 %v671_v36, %v1546_v5 }
 0xb87   :  { %v674_v29 = vsel %vm148_vm8, %v669_v28, -inf  ;;  %v677_v38 = vsel %vm148_vm8, %v672_v37, -inf }
 0xb88   :  { %v764_v30 = vpop.f32.mrf.mxu3  ;;  %675 = vmax.xlane.f32.xlu2 %v674_v29 }
 0xb89   :  { %v765_v31 = vadd.f32 %v764_v30, %v1539_v1 }
 0xb8b   :  { %v770_v32 = vsel %vm148_vm8, %v765_v31, -inf }
 0xb8c   :  { %771 = vmax.xlane.f32.xlu1 %v770_v32 }
 0xb90   :  { %v767_v33 = vpop.f32.mrf.mxu3 }
 0xb91   :  { %v768_v34 = vadd.f32 %v767_v33, %v1546_v5 }
 0xb93   :  { %v773_v35 = vsel %vm148_vm8, %v768_v34, -inf }
 0xb94   :  { %774 = vmax.xlane.f32.xlu0 %v773_v35 }
 0xb9c   :  { %678 = vmax.xlane.f32.xlu0 %v677_v38 }
 0xba0   :  { %1338 = vrot.lane.b32.xlu2 %v1658_v21, %s1437_s1 }
 0xbfb   :  { %v676_v39 = vpop.xlane.xlu2 %675 }
 0xbfc   :  { %v680_v1 = vsub.f32 %v669_v28, %v676_v39 }
 0xbfe   :  { %v682_v40 = vmul.f32 1.442695, %v680_v1 }
 0xbff   :  { %v772_v41 = vpop.xlane.xlu1 %771 }
 0xc00   :  { %1404 = vpow2.f32 %v682_v40  ;;  %v776_v42 = vsub.f32 %v765_v31, %v772_v41  ;;  %v904_v31 = vld [vmem:[%s1787_s8] sm:$0xf] }
 0xc01   :  { %v911_v32 = vsel %vm909_vm7, %v904_v31, 0  ;;  %v1308_v31 = vld [vmem:[%s1785_s6 + $0x28] sm:$0xff] }
 0xc02   :  { %v778_v43 = vmul.f32 1.442695, %v776_v42  ;;  %920 = vmatpush.bf16.msra.mxu3 %v911_v32  ;;  %v1307_v32 = vld [vmem:[%s1785_s6 + $0x20] sm:$0xff] }
 0xc03   :  { %v1339_v44 = vpop.permute.xlu2 %1338 }
 0xc04   :  { %1406 = vpow2.f32 %v778_v43  ;;  %v1340_v45 = vunpack.i.l.bf16 %v1339_v44  ;;  %v1341_v47 = vunpack.i.h.bf16 %v1339_v44 }
 0xc06   :  { %v1405_v46 = vpop.eup %1404  ;;  %818 = vmatpush.msrb.mxu2 %v1340_v45 }
 0xc07   :  { %v775_v5 = vpop.xlane.xlu0 %774  ;;  %v686_v48 = vsel %vm148_vm8, %v1405_v46, 0.0 }
 0xc08   :  { %v777_v51 = vsub.f32 %v768_v34, %v775_v5  ;;  %687 = vadd.xlane.f32.xlu0 %v686_v48  ;;  %819 = vmatpush.msrb.mxu2 %v1341_v47 }
 0xc0a   :  { %v1407_v52 = vpop.eup %1406  ;;  %v780_v53 = vmul.f32 1.442695, %v777_v51 }
 0xc0b   :  { %v782_v54 = vsel %vm148_vm8, %v1407_v52, 0.0 }
 0xc0c   :  { %1408 = vpow2.f32 %v780_v53  ;;  %783 = vadd.xlane.f32.xlu1 %v782_v54 }
 0xc0f   :  { %v679_v55 = vpop.xlane.xlu0 %678 }
 0xc10   :  { %v681_v56 = vsub.f32 %v672_v37, %v679_v55  ;;  %v1363_v37 = vld [vmem:[%s1780_s2 + $0xb] ss:$0 sm:$0xff] }
 0xc12   :  { %v1409_v57 = vpop.eup %1408  ;;  %v684_v58 = vmul.f32 1.442695, %v681_v56 }
 0xc13   :  { %v785_v59 = vsel %vm148_vm8, %v1409_v57, 0.0 }
 0xc14   :  { %1410 = vpow2.f32 %v684_v58  ;;  %786 = vadd.xlane.f32.xlu1 %v785_v59 }
 0xc1a   :  { %v1411_v60 = vpop.eup %1410 }
 0xc1b   :  { %v689_v61 = vsel %vm148_vm8, %v1411_v60, 0.0 }
 0xc1c   :  { %690 = vadd.xlane.f32.xlu0 %v689_v61 }
 0xc2d   :  { %1343 = vrot.lane.b32.xlu1 %v1658_v21, %s1434_s23 }
 0xc7b   :  { %v688_v6 = vpop.xlane.xlu0 %687 }
 0xc7f   :  { %v784_v62 = vpop.xlane.xlu1 %783 }
 0xc80   :  { %1412 = vrcp.f32 %v784_v62  ;;  %v1305_v62 = vld [vmem:[%s1784_s5 + $0x10] sm:$0xff] }
 0xc86   :  { %v1413_v63 = vpop.eup %1412 }
 0xc87   :  { %v790_v0 = vmul.f32 %v1413_v63, %v1407_v52  ;;  %v787_v2 = vpop.xlane.xlu1 %786 }
 0xc88   :  { %1414 = vrcp.f32 %v787_v2 }
 0xc89   :  { %1226 = vmatmul.msk.f32.vlgmr.msrb.gmra.mxu2 %vm148_vm8, %v790_v0  ;;  %1416 = vrcp.f32 %v688_v6 }
 0xc8e   :  { %v1415_v3 = vpop.eup %1414 }
 0xc8f   :  { %v791_v4 = vmul.f32 %v1415_v3, %v1409_v57  ;;  %v691_v7 = vpop.xlane.xlu0 %690  ;;  %v1417_v9 = vpop.eup %1416 }
 0xc90   :  { %1418 = vrcp.f32 %v691_v7  ;;  %v694_v15 = vmul.f32 %v1417_v9, %v1405_v46 }
 0xc91   :  { %1227 = vmatmul.msk.f32.gmra.mxu2 %vm148_vm8, %v791_v4 }
 0xc96   :  { %v1419_v16 = vpop.eup %1418 }
 0xc97   :  { %v695_v17 = vmul.f32 %v1419_v16, %v1411_v60 }
 0xc9f   :  { %v1344_v8 = vpop.permute.xlu1 %1343 }
 0xca0   :  { %v1345_v11 = vunpack.i.l.bf16 %v1344_v8  ;;  %v1346_v14 = vunpack.i.h.bf16 %v1344_v8 }
 0xca2   :  { %722 = vmatpush.msrb.mxu1 %v1345_v11 }
 0xca4   :  { %723 = vmatpush.msrb.mxu1 %v1346_v14 }
 0xca5   :  { %1220 = vmatmul.msk.f32.vlgmr.msrb.gmra.mxu1 %vm148_vm8, %v694_v15 }
 0xca6   :  { %895 = vmatpush.bf16.msra.mxu1 %v1304_v19 }
 0xcaa   :  { %896 = vmatpush.bf16.msra.mxu1 %v1303_v49  ;;  %v1365_v49 = vld [vmem:[%s1780_s2 + $0xf] ss:$0 sm:$0xff] }
 0xcad   :  { %1221 = vmatmul.msk.f32.gmra.mxu1 %vm148_vm8, %v695_v17 }
 0xd0c   :  { %v821_v20 = vpop.f32.mrf.mxu2 }
 0xd14   :  { %v824_v21 = vpop.f32.mrf.mxu2 }
 0xd15   :  { %v1347_v22 = vpack.i.bf16 %v824_v21, %v821_v20  ;;  %v1364_v20 = vld [vmem:[%s1780_s2 + $0xe] ss:$0 sm:$0xff] }
 0xd17   :  { %1348 = vrot.lane.b32.xlu0 %v1347_v22, %s1438_s11 }
 0xd22   :  { %v725_v24 = vpop.f32.mrf.mxu1 }
 0xd2a   :  { %v728_v27 = vpop.f32.mrf.mxu1 }
 0xd89   :  { %v1349_v25 = vpop.permute.xlu0 %1348 }
 0xd8a   :  { %v1351_v26 = vunpack.i.h.bf16 %v1349_v25  ;;  %v1350_v50 = vunpack.i.l.bf16 %v1349_v25 }
 0xd8c   :  { %v836_v28 = vsel %vm148_vm8, %v728_v27, %v1351_v26  ;;  %v835_v29 = vsel %vm148_vm8, %v725_v24, %v1350_v50 }
 0xd8d   :  { %v837_v30 = vpack.c.bf16 %v836_v28, %v835_v29  ;;  %v1310_v29 = vld [vmem:[%s1785_s6 + $0x38] sm:$0xff] }
 0xd8e   :  { %1079 = vmatpush.bf16.msra.mxu0 %v1310_v29 }
 0xd8f   :  { %1240 = vmatmul.msk.bf16.vlgmr.msrb.gmra.mxu0 %vm37_vm0, %v837_v30  ;;  %1249 = vmatmul.msk.bf16.vlgmr.msra.gmra.mxu1 %vm37_vm0, %v837_v30  ;;  %v1309_v30 = vld [vmem:[%s1785_s6 + $0x30] sm:$0xff] }
 0xd92   :  { %1080 = vmatpush.bf16.msra.mxu0 %v1309_v30 }
 0xd96   :  { %1081 = vmatpush.bf16.msra.mxu0 %v1308_v31 }
 0xd9a   :  { %1082 = vmatpush.bf16.msra.mxu0 %v1307_v32 }
 0xe0c   :  { %v898_v33 = vpop.f32.mrf.mxu1  ;;  %v868_v36 = vpop.f32.mrf.mxu0 }
 0xe0d   :  { %v869_v39 = vadd.f32 %v1363_v37, %v868_v36 }
 0xe14   :  { %v900_v34 = vpop.f32.mrf.mxu1  ;;  %v870_v42 = vpop.f32.mrf.mxu0 }
 0xe15   :  { %v903_v35 = vpack.c.bf16 %v900_v34, %v898_v33  ;;  %v871_v45 = vadd.f32 %v1363_v37, %v870_v42  ;;  %v1366_v33 = vld [vmem:[%s1780_s2 + $0xc] ss:$0 sm:$0xff] }
 0xe17   :  { %1250 = vmatmul.msk.bf16.vlgmr.msra.gmra.mxu3 %vm905_vm9, %v903_v35 }
 0xe9a   :  { %v922_v38 = vpop.f32.mrf.mxu3 }
 0xe9b   :  { %v927_v1 = vmul.f32 2.0, %v922_v38 }
 0xe9d   :  { %v929_v40 = vadd.f32 %v927_v1, %v869_v39 }
 0xe9f   :  { %v931_v41 = vadd.f32 %v929_v40, %v1644_v12 }
 0xea1   :  { %v933_v43 = vsel %vm37_vm0, %v931_v41, 0.0 }
 0xea2   :  { %v924_v44 = vpop.f32.mrf.mxu3  ;;  %934 = vadd.xlane.f32.xlu2 %v933_v43 }
 0xea3   :  { %v928_v46 = vmul.f32 2.0, %v924_v44 }
 0xea5   :  { %v930_v47 = vadd.f32 %v928_v46, %v871_v45 }
 0xea7   :  { %v932_v5 = vadd.f32 %v930_v47, %v1646_v13  ;;  %v1306_v13 = vld [vmem:[%s1784_s5 + $0x18] sm:$0xff] }
 0xea8   :  { %1011 = vmatpush.bf16.msra.mxu2 %v1306_v13 }
 0xea9   :  { %v936_v48 = vsel %vm37_vm0, %v932_v5, 0.0 }
 0xeaa   :  { %937 = vadd.xlane.f32.xlu1 %v936_v48 }
 0xeac   :  { %1012 = vmatpush.bf16.msra.mxu2 %v1305_v62 }
 0xf15   :  { %v935_v51 = vpop.xlane.xlu2 %934 }
 0xf16   :  { %v939_v52 = vmul.f32 %v935_v51, %v1497_v10 }
 0xf18   :  { %v941_v53 = vsub.f32 %v931_v41, %v939_v52 }
 0xf1a   :  { %v943_v54 = vmul.f32 %v941_v53, %v941_v53 }
 0xf1c   :  { %v945_v12 = vsel %vm37_vm0, %v943_v54, 0.0 }
 0xf1d   :  { %v938_v55 = vpop.xlane.xlu1 %937  ;;  %946 = vadd.xlane.f32.xlu0 %v945_v12 }
 0xf1e   :  { %v940_v56 = vmul.f32 %v938_v55, %v1497_v10 }
 0xf20   :  { %v942_v57 = vsub.f32 %v932_v5, %v940_v56  ;;  %v1367_v56 = vld [vmem:[%s1780_s2 + $0xd] ss:$0 sm:$0xff] }
 0xf22   :  { %v944_v58 = vmul.f32 %v942_v57, %v942_v57 }
 0xf24   :  { %v948_v59 = vsel %vm37_vm0, %v944_v58, 0.0 }
 0xf25   :  { %949 = vadd.xlane.f32.xlu2 %v948_v59 }
 0xf90   :  { %v947_v60 = vpop.xlane.xlu0 %946 }
 0xf91   :  { %v951_v61 = vmul.f32 %v947_v60, %v1497_v10 }
 0xf93   :  { %v953_v63 = vadd.f32 1e-05, %v951_v61 }
 0xf95   :  { %1420 = vrsqrt.f32 %v953_v63  ;;  %vm961_vm10 = vweird.f32 %v953_v63 }
 0xf98   :  { %v950_v0 = vpop.xlane.xlu2 %949 }
 0xf99   :  { %v952_v2 = vmul.f32 %v950_v0, %v1497_v10 }
 0xf9b   :  { %v1421_v3 = vpop.eup %1420  ;;  %v954_v4 = vadd.f32 1e-05, %v952_v2 }
 0xf9c   :  { %v956_v6 = vmul.f32 %v1421_v3, %v953_v63  ;;  %vm962_vm8 = vweird.f32 %v1421_v3 }
 0xf9d   :  { %1422 = vrsqrt.f32 %v954_v4  ;;  %vm963_vm11 = vmor %vm961_vm10, %vm962_vm8  ;;  %vm971_vm13 = vweird.f32 %v954_v4 }
 0xf9e   :  { %v957_v7 = vmul.f32 %v1421_v3, %v956_v6 }
 0xfa0   :  { %v958_v8 = vmul.f32 0.5, %v957_v7 }
 0xfa2   :  { %v959_v9 = vsub.f32 1.5, %v958_v8 }
 0xfa3   :  { %v1423_v11 = vpop.eup %1422 }
 0xfa4   :  { %v960_v14 = vmul.f32 %v1421_v3, %v959_v9  ;;  %v966_v15 = vmul.f32 %v1423_v11, %v954_v4  ;;  %vm972_vm12 = vweird.f32 %v1423_v11 }
 0xfa5   :  { %vm973_vm14 = vmor %vm971_vm13, %vm972_vm12 }
 0xfa6   :  { %v967_v16 = vmul.f32 %v1423_v11, %v966_v15  ;;  %v964_v17 = vsel %vm963_vm11, %v1421_v3, %v960_v14 }
 0xfa7   :  { %v975_v21 = vmul.f32 %v964_v17, %v941_v53 }
 0xfa8   :  { %v968_v18 = vmul.f32 0.5, %v967_v16 }
 0xfa9   :  { %v978_v24 = vmul.f32 %v1364_v20, %v975_v21 }
 0xfaa   :  { %v969_v19 = vsub.f32 1.5, %v968_v18 }
 0xfab   :  { %v981_v50 = vadd.f32 %v1365_v49, %v978_v24 }
 0xfac   :  { %v970_v22 = vmul.f32 %v1423_v11, %v969_v19 }
 0xfae   :  { %v974_v23 = vsel %vm973_vm14, %v1423_v11, %v970_v22 }
 0xfaf   :  { %v976_v25 = vmul.f32 %v974_v23, %v942_v57 }
 0xfb1   :  { %v979_v26 = vmul.f32 %v1364_v20, %v976_v25 }
 0xfb3   :  { %v982_v27 = vadd.f32 %v1365_v49, %v979_v26 }
 0xfb5   :  { %v983_v28 = vpack.c.bf16 %v982_v27, %v981_v50 }
 0xfb7   :  { %1263 = vmatmul.msk.bf16.vlgmr.msra.gmra.mxu2 %vm37_vm0, %v983_v28 }
0x103a   :  { %v1014_v34 = vpop.f32.mrf.mxu2 }
0x103b   :  { %v1015_v35 = vadd.f32 %v1366_v33, %v1014_v34 }
0x103d   :  { %v1021_v36 = vmul.f32 0.044715, %v1015_v35  ;;  %v1019_v51 = vmul.f32 0.5, %v1015_v35 }
0x103f   :  { %v1023_v37 = vmul.f32 %v1021_v36, %v1015_v35 }
0x1041   :  { %v1025_v38 = vmul.f32 %v1023_v37, %v1015_v35 }
0x1042   :  { %v1016_v39 = vpop.f32.mrf.mxu2 }
0x1043   :  { %v1027_v1 = vadd.f32 %v1025_v38, %v1015_v35  ;;  %v1017_v40 = vadd.f32 %v1366_v33, %v1016_v39 }
0x1045   :  { %v1022_v41 = vmul.f32 0.044715, %v1017_v40  ;;  %v1029_v42 = vmul.f32 0.7978846, %v1027_v1  ;;  %v1020_v52 = vmul.f32 0.5, %v1017_v40 }
0x1047   :  { %v1024_v43 = vmul.f32 %v1022_v41, %v1017_v40  ;;  %1424 = vtanh.f32 %v1029_v42 }
0x1049   :  { %v1026_v44 = vmul.f32 %v1024_v43, %v1017_v40 }
0x104b   :  { %v1028_v45 = vadd.f32 %v1026_v44, %v1017_v40 }
0x104d   :  { %v1030_v46 = vmul.f32 0.7978846, %v1028_v45  ;;  %v1425_v47 = vpop.eup %1424 }
0x104e   :  { %v1033_v5 = vadd.f32 1.0, %v1425_v47 }
0x104f   :  { %1426 = vtanh.f32 %v1030_v46 }
0x1050   :  { %v1035_v54 = vmul.f32 %v1033_v5, %v1019_v51 }
0x1055   :  { %v1427_v48 = vpop.eup %1426 }
0x1056   :  { %v1034_v53 = vadd.f32 1.0, %v1427_v48 }
0x1058   :  { %v1036_v12 = vmul.f32 %v1034_v53, %v1020_v52 }
0x105a   :  { %v1037_v55 = vpack.c.bf16 %v1036_v12, %v1035_v54 }
0x105c   :  { %1288 = vmatmul.msk.bf16.vlgmr.msra.gmra.mxu0 %vm519_vm15, %v1037_v55 }
0x10d9   :  { %v1084_v57 = vpop.f32.mrf.mxu0 }
0x10da   :  { %v1085_v58 = vadd.f32 %v1367_v56, %v1084_v57 }
0x10dc   :  { %v1089_v59 = vadd.f32 %v1085_v58, %v981_v50 }
0x10de   :  { %v1091_v13 = vsel %vm37_vm0, %v1089_v59, 0.0 }
0x10df   :  { %1092 = vadd.xlane.f32.xlu2 %v1091_v13 }
0x10e1   :  { %v1086_v60 = vpop.f32.mrf.mxu0 }
0x10e2   :  { %v1087_v61 = vadd.f32 %v1367_v56, %v1086_v60 }
0x10e4   :  { %v1090_v62 = vadd.f32 %v1087_v61, %v982_v27  ;;  %v1368_v27 = vld [vmem:[%s1780_s2 + $0x10] ss:$0 sm:$0xff] }
0x10e6   :  { %v1094_v63 = vsel %vm37_vm0, %v1090_v62, 0.0 }
0x10e7   :  { %1095 = vadd.xlane.f32.xlu1 %v1094_v63 }
0x1152   :  { %v1093_v0 = vpop.xlane.xlu2 %1092 }
0x1153   :  { %v1097_v2 = vmul.f32 %v1093_v0, %v1497_v10 }
0x1155   :  { %v1099_v3 = vsub.f32 %v1089_v59, %v1097_v2 }
0x1157   :  { %v1101_v4 = vmul.f32 %v1099_v3, %v1099_v3 }
0x1159   :  { %v1103_v6 = vsel %vm37_vm0, %v1101_v4, 0.0 }
0x115a   :  { %v1096_v7 = vpop.xlane.xlu1 %1095  ;;  %1104 = vadd.xlane.f32.xlu2 %v1103_v6 }
0x115b   :  { %v1098_v8 = vmul.f32 %v1096_v7, %v1497_v10 }
0x115d   :  { %v1100_v9 = vsub.f32 %v1090_v62, %v1098_v8 }
0x115f   :  { %v1102_v11 = vmul.f32 %v1100_v9, %v1100_v9 }
0x1161   :  { %v1106_v14 = vsel %vm37_vm0, %v1102_v11, 0.0 }
0x1162   :  { %1107 = vadd.xlane.f32.xlu0 %v1106_v14 }
0x11cd   :  { %v1105_v15 = vpop.xlane.xlu2 %1104 }
0x11ce   :  { %v1109_v16 = vmul.f32 %v1105_v15, %v1497_v10 }
0x11d0   :  { %v1111_v17 = vadd.f32 1e-05, %v1109_v16 }
0x11d2   :  { %1428 = vrsqrt.f32 %v1111_v17  ;;  %vm1119_vm1 = vweird.f32 %v1111_v17 }
0x11d5   :  { %v1108_v18 = vpop.xlane.xlu0 %1107 }
0x11d6   :  { %v1110_v19 = vmul.f32 %v1108_v18, %v1497_v10  ;;  %v1369_v10 = vld [vmem:[%s1780_s2 + $0x11] ss:$0 sm:$0xff] }
0x11d8   :  { %v1429_v20 = vpop.eup %1428  ;;  %v1112_v21 = vadd.f32 1e-05, %v1110_v19 }
0x11d9   :  { %v1114_v22 = vmul.f32 %v1429_v20, %v1111_v17  ;;  %vm1120_vm15 = vweird.f32 %v1429_v20 }
0x11da   :  { %1430 = vrsqrt.f32 %v1112_v21  ;;  %vm1121_vm2 = vmor %vm1119_vm1, %vm1120_vm15  ;;  %vm1129_vm4 = vweird.f32 %v1112_v21 }
0x11db   :  { %v1115_v23 = vmul.f32 %v1429_v20, %v1114_v22 }
0x11dd   :  { %v1116_v49 = vmul.f32 0.5, %v1115_v23 }
0x11df   :  { %v1117_v24 = vsub.f32 1.5, %v1116_v49 }
0x11e0   :  { %v1431_v25 = vpop.eup %1430 }
0x11e1   :  { %v1118_v26 = vmul.f32 %v1429_v20, %v1117_v24  ;;  %v1124_v50 = vmul.f32 %v1431_v25, %v1112_v21  ;;  %vm1130_vm3 = vweird.f32 %v1431_v25 }
0x11e2   :  { %vm1131_vm5 = vmor %vm1129_vm4, %vm1130_vm3 }
0x11e3   :  { %v1122_v28 = vsel %vm1121_vm2, %v1429_v20, %v1118_v26  ;;  %v1125_v29 = vmul.f32 %v1431_v25, %v1124_v50 }
0x11e4   :  { %v1133_v30 = vmul.f32 %v1122_v28, %v1099_v3 }
0x11e5   :  { %v1126_v31 = vmul.f32 0.5, %v1125_v29 }
0x11e6   :  { %v1136_v32 = vmul.f32 %v1368_v27, %v1133_v30 }
0x11e7   :  { %v1127_v33 = vsub.f32 1.5, %v1126_v31 }
0x11e8   :  { %v1139_v34 = vadd.f32 %v1369_v10, %v1136_v32 }
0x11e9   :  { %v1128_v35 = vmul.f32 %v1431_v25, %v1127_v33 }
0x11ea   :  { %1141 = vst.msk [vmem:[%s1788_s9] sm:$0xff] %vm37_vm0, %v1139_v34 }
0x11eb   :  { %v1132_v36 = vsel %vm1131_vm5, %v1431_v25, %v1128_v35 }
0x11ec   :  { %v1134_v37 = vmul.f32 %v1132_v36, %v1100_v9 }
0x11ee   :  { %v1137_v38 = vmul.f32 %v1368_v27, %v1134_v37 }
0x11f0   :  { %v1140_v39 = vadd.f32 %v1369_v10, %v1137_v38 }
0x11f2   :  { %1142 = vst.msk [vmem:[%s1788_s9 + $0x8] sm:$0xff] %vm37_vm0, %v1140_v39 }

</bundles_post_ra>
